<compile_context>
chip_gen: v7x
topology: tpu7x:2x2x1
jax: 0.10.0
libtpu: 0.0.40
codegen_flags: <defaults>
</compile_context>

<pallas_src>
import math
from functools import partial

import jax
import jax.numpy as jnp
from jax.experimental import pallas as pl
from jax.experimental.pallas import tpu as pltpu

LN_EPS = 1e-5  # PyTorch nn.LayerNorm default


# ----------------------------- in-kernel helpers -----------------------------

def _erf(x):
    # Abramowitz & Stegun 7.1.26 (|err| < 1.5e-7) -> erf-based ("exact") GELU
    # semantics of F.gelu.  Exact divide (review: approx reciprocal voided the
    # polynomial's accuracy claim).
    c = 0.3275911
    a1, a2, a3, a4, a5 = (0.254829592, -0.284496736, 1.421413741,
                          -1.453152027, 1.061405429)
    ax = jnp.abs(x)
    t = 1.0 / (1.0 + c * ax)
    poly = t * (a1 + t * (a2 + t * (a3 + t * (a4 + t * a5))))
    y = 1.0 - poly * jnp.exp(-ax * ax)
    return jnp.where(x >= 0.0, y, -y)


def _gelu_exact(x):
    return 0.5 * x * (1.0 + _erf(x * (1.0 / math.sqrt(2.0))))


def _layernorm(x, gamma, beta):
    mu = jnp.mean(x, axis=-1, keepdims=True)
    xc = x - mu
    var = jnp.mean(xc * xc, axis=-1, keepdims=True)
    inv = jax.lax.rsqrt(var + LN_EPS)
    return xc * inv * gamma + beta


# ------------------------------- Pallas kernel --------------------------------

def _transformer_kernel(n_heads, resident, ffn_chunk,
                        x_ref,
                        wq_ref, wk_ref, wv_ref, bq_ref, bk_ref, bv_ref,
                        wo_ref, bo_ref, g1_ref, be1_ref,
                        w1_ref, b1_ref, w2_ref, b2_ref, g2_ref, be2_ref,
                        o_ref, act_ref):
    layer = pl.program_id(1)
    n_layers = pl.num_programs(1)
    # Resident mode: weight blocks hold ALL layers -> index with the dynamic
    # layer id.  Streamed mode: blocks hold one layer -> static index 0.
    li = layer if resident else 0

    Bb, S, D = act_ref.shape
    H = n_heads
    hd = D // H
    N = Bb * S

    # Load this batch block once (layer 0); carry activations in VMEM scratch
    # across the layer axis of the grid.
    @pl.when(layer == 0)
    def _():
        act_ref[...] = x_ref[...].astype(jnp.float32)

    x2d = act_ref[...].reshape(N, D)          # (N, D) f32 residual path
    xb = x2d.astype(jnp.bfloat16)             # matmul LHS (bf16 in, f32 accum)

    # Per-layer parameters (small; loaded once per layer).
    wq, wk, wv = wq_ref[li], wk_ref[li], wv_ref[li]   # (H, D, hd) bf16
    bq, bk, bv = bq_ref[li], bk_ref[li], bv_ref[li]   # (H, 1, hd) f32
    wo = wo_ref[li]                                   # (H, hd, D) bf16
    bo = bo_ref[li]                                   # (1, D)     f32
    g1, be1 = g1_ref[li], be1_ref[li]                 # (1, D)
    g2, be2 = g2_ref[li], be2_ref[li]                 # (1, D)
    b1, b2 = b1_ref[li], b2_ref[li]                   # (1, F), (1, D)

    # ---- multi-head self-attention: per-head, full-row-slab matmuls ----
    # 1/sqrt(hd) is pre-folded into wq / bq in the wrapper.
    attn = jnp.zeros((N, D), jnp.float32)
    for h in range(H):
        q = jnp.dot(xb, wq[h], preferred_element_type=jnp.float32) + bq[h]  # (N, hd)
        k = jnp.dot(xb, wk[h], preferred_element_type=jnp.float32) + bk[h]
        v = jnp.dot(xb, wv[h], preferred_element_type=jnp.float32) + bv[h]

        qb = q.reshape(Bb, S, hd).astype(jnp.bfloat16)
        kb = k.reshape(Bb, S, hd).astype(jnp.bfloat16)
        vb = v.reshape(Bb, S, hd).astype(jnp.bfloat16)

        s = jnp.einsum('bqd,bkd->bqk', qb, kb,
                       preferred_element_type=jnp.float32)          # (Bb, S, S)
        s = s - jnp.max(s, axis=-1, keepdims=True)
        e = jnp.exp(s)
        denom = jnp.sum(e, axis=-1, keepdims=True)                  # (Bb, S, 1)
        ctx = jnp.einsum('bqk,bkd->bqd', e.astype(jnp.bfloat16), vb,
                         preferred_element_type=jnp.float32)        # (Bb, S, hd)
        ctx = ctx / denom                         # deferred softmax normalize

        # per-head slice of Wo^T, accumulated (== concat(heads) @ Wo^T)
        attn = attn + jnp.dot(ctx.reshape(N, hd).astype(jnp.bfloat16), wo[h],
                              preferred_element_type=jnp.float32)
    attn = attn + bo

    y = _layernorm(x2d + attn, g1, be1)
    yb = y.astype(jnp.bfloat16)

    # ---- feed-forward, chunked over the F dimension ----
    F = w1_ref.shape[-1]
    fc = min(ffn_chunk, F)
    if resident:
        w1v, w2v = w1_ref[li], w2_ref[li]                 # (D, F), (F, D) bf16
        w1c = lambda lo, hi: w1v[:, lo:hi]
        w2c = lambda lo, hi: w2v[lo:hi, :]
    else:
        w1c = lambda lo, hi: w1_ref[0, :, lo:hi]          # slice the ref block
        w2c = lambda lo, hi: w2_ref[0, lo:hi, :]

    h2 = jnp.zeros((N, D), jnp.float32)
    for lo in range(0, F, fc):
        hi = min(lo + fc, F)
        h1 = jnp.dot(yb, w1c(lo, hi),
                     preferred_element_type=jnp.float32) + b1[:, lo:hi]
        h1 = _gelu_exact(h1)
        h2 = h2 + jnp.dot(h1.astype(jnp.bfloat16), w2c(lo, hi),
                          preferred_element_type=jnp.float32)
    h2 = h2 + b2

    z = _layernorm(y + h2, g2, be2)
    act_ref[...] = z.reshape(Bb, S, D)

    @pl.when(layer == n_layers - 1)
    def _():
        o_ref[...] = z.reshape(Bb, S, D).astype(o_ref.dtype)


# --------------------------------- wrappers -----------------------------------

def _pt_to_kernel_layout(pt_layer, n_heads):
    """PyTorch-shaped layer params -> kernel layout (head-major, pre-transposed,
    matmul operands in bf16, 1/sqrt(hd) folded into Wq/bq)."""
    (in_w, in_b, out_w, out_b, g1, be1,
     l1_w, l1_b, l2_w, l2_b, g2, be2) = pt_layer
    D = out_w.shape[0]
    H = n_heads
    hd = D // H
    scale = 1.0 / math.sqrt(hd)

    def head_cols(w_t):                  # (D_in, D_out) -> (H, D_in, hd)
        return jnp.transpose(w_t.reshape(D, H, hd), (1, 0, 2))

    wq = head_cols(in_w[:D].T) * scale
    wk = head_cols(in_w[D:2 * D].T)
    wv = head_cols(in_w[2 * D:].T)
    bq = in_b[:D].reshape(H, 1, hd) * scale
    bk = in_b[D:2 * D].reshape(H, 1, hd)
    bv = in_b[2 * D:].reshape(H, 1, hd)
    wo = out_w.T.reshape(H, hd, D)       # rows of Wo^T grouped per head
    bo = out_b.reshape(1, D)
    w1 = l1_w.T                          # (D, F)
    b1 = l1_b.reshape(1, -1)
    w2 = l2_w.T                          # (F, D)
    b2 = l2_b.reshape(1, -1)

    bf = lambda a: a.astype(jnp.bfloat16)   # MXU operands in bf16 (f32 accum)
    return (bf(wq), bf(wk), bf(wv), bq, bk, bv, bf(wo), bo,
            g1.reshape(1, -1), be1.reshape(1, -1),
            bf(w1), b1, bf(w2), b2,
            g2.reshape(1, -1), be2.reshape(1, -1))


def _vmem_limit_bytes():
    cap = 128 * 1024 * 1024
    try:
        cap = int(pltpu.get_tpu_info().vmem_capacity_bytes)
    except Exception:
        pass
    # ~3/4 of physical VMEM (=> ~48 MiB on v7x, ~96 MiB on v5e/v6e), capped.
    return int(min(cap * 3 // 4, 112 * 1024 * 1024))


def _pick_batch_block(B, S, rows_per_block):
    """Largest divisor of B that keeps ~rows_per_block rows per grid step while
    preferring >= 2 steps on the parallel axis (2 TensorCores on v7x)."""
    target = max(1, rows_per_block // max(S, 1))
    divisors = [d for d in range(1, B + 1) if B % d == 0]
    pref = [d for d in divisors if d <= target and B // d >= 2]
    cands = pref or [d for d in divisors if d <= target] or [1]
    return max(cands)


def transformer_forward(x, layer_params, n_heads, *, rows_per_block=256,
                        ffn_chunk=1024):
    """x: [B, S, D] f32.  layer_params: list (n_layers) of kernel-layout tuples."""
    B, S, D = x.shape
    L = len(layer_params)
    assert D % n_heads == 0

    # Stack per-layer params along a leading layer axis.
    stacked = [jnp.stack(ws, axis=0) for ws in zip(*layer_params)]

    bb = _pick_batch_block(B, S, rows_per_block)
    grid = (B // bb, L)

    vmem_limit = _vmem_limit_bytes()
    stacked_bytes = sum(int(a.size) * a.dtype.itemsize for a in stacked)
    # Small-model fast path: all layers' weights resident in VMEM (the pipeline
    # double-buffers each input, hence the factor 2) -> weights are DMA'd once,
    # never re-fetched per batch block.
    resident = 2 * stacked_bytes <= vmem_limit // 3

    x_spec = pl.BlockSpec((bb, S, D), lambda b, l: (b, 0, 0))
    out_spec = pl.BlockSpec((bb, S, D), lambda b, l: (b, 0, 0))

    def wspec(a):
        nd = a.ndim
        if resident:
            return pl.BlockSpec(a.shape, lambda b, l, _nd=nd: (0,) * _nd)
        return pl.BlockSpec((1,) + a.shape[1:],
                            lambda b, l, _nd=nd: (l,) + (0,) * (_nd - 1))

    return pl.pallas_call(
        partial(_transformer_kernel, n_heads, resident, ffn_chunk),
        out_shape=jax.ShapeDtypeStruct((B, S, D), x.dtype),
        grid=grid,
        in_specs=[x_spec] + [wspec(a) for a in stacked],
        out_specs=out_spec,
        scratch_shapes=[pltpu.VMEM((bb, S, D), jnp.float32)],
        compiler_params=pltpu.CompilerParams(
            dimension_semantics=("parallel", "arbitrary"),
            vmem_limit_bytes=vmem_limit),
    )(x, *stacked)


def init_pytorch_params(key, d_model, d_ff, n_layers):
    """Deterministic synthetic init with PyTorch parameter shapes."""
    params = []
    for _ in range(n_layers):
        key, k1, k2, k3, k4, k5, k6, k7, k8 = jax.random.split(key, 9)
        in_proj_w = 0.05 * jax.random.normal(k1, (3 * d_model, d_model), jnp.float32)
        in_proj_b = 0.05 * jax.random.normal(k2, (3 * d_model,), jnp.float32)
        out_proj_w = 0.05 * jax.random.normal(k3, (d_model, d_model), jnp.float32)
        out_proj_b = 0.05 * jax.random.normal(k4, (d_model,), jnp.float32)
        lin1_w = 0.05 * jax.random.normal(k5, (d_ff, d_model), jnp.float32)
        lin1_b = 0.05 * jax.random.normal(k6, (d_ff,), jnp.float32)
        lin2_w = 0.05 * jax.random.normal(k7, (d_model, d_ff), jnp.float32)
        lin2_b = 0.05 * jax.random.normal(k8, (d_model,), jnp.float32)
        g1 = jnp.ones((d_model,), jnp.float32)
        be1 = jnp.zeros((d_model,), jnp.float32)
        g2 = jnp.ones((d_model,), jnp.float32)
        be2 = jnp.zeros((d_model,), jnp.float32)
        params.append((in_proj_w, in_proj_b, out_proj_w, out_proj_b,
                       g1, be1, lin1_w, lin1_b, lin2_w, lin2_b, g2, be2))
    return params


def _reference_forward(x, pt_params, n_heads):
    """Pure-JAX f32 reference matching the PyTorch module (for validation)."""
    H = n_heads
    for (in_w, in_b, out_w, out_b, g1, be1,
         l1_w, l1_b, l2_w, l2_b, g2, be2) in pt_params:
        B, S, D = x.shape
        hd = D // H
        qkv = x @ in_w.T + in_b
        q, k, v = qkv[..., :D], qkv[..., D:2 * D], qkv[..., 2 * D:]
        split = lambda t: t.reshape(B, S, H, hd).transpose(0, 2, 1, 3)
        qh, kh, vh = split(q), split(k), split(v)
        s = jnp.einsum('bhqd,bhkd->bhqk', qh, kh) / math.sqrt(hd)
        p = jax.nn.softmax(s, axis=-1)
        ctx = jnp.einsum('bhqk,bhkd->bhqd', p, vh)
        ctx = ctx.transpose(0, 2, 1, 3).reshape(B, S, D)
        attn = ctx @ out_w.T + out_b

        def ln(t, g, b):
            mu = t.mean(-1, keepdims=True)
            var = ((t - mu) ** 2).mean(-1, keepdims=True)
            return (t - mu) * jax.lax.rsqrt(var + LN_EPS) * g + b

        y = ln(x + attn, g1, be1)
        h1 = jax.nn.gelu(y @ l1_w.T + l1_b, approximate=False)
        x = ln(y + (h1 @ l2_w.T + l2_b), g2, be2)
    return x


if __name__ == "__main__":
    # Small shapes consistent with the module (embedding_dim divisible by n_heads).
    B, S = 2, 8
    D, H, L, FF = 32, 4, 2, 64

    key = jax.random.PRNGKey(0)
    key, xk = jax.random.split(key)
    x = jax.random.normal(xk, (B, S, D), dtype=jnp.float32)

    pt_params = init_pytorch_params(key, D, FF, L)
    kernel_params = [_pt_to_kernel_layout(p, H) for p in pt_params]

    out = transformer_forward(x, kernel_params, H)
    out = jax.block_until_ready(out)

    assert out.shape == (B, S, D), out.shape
    assert bool(jnp.all(jnp.isfinite(out)))

    # Kernel uses bf16 matmul operands (f32 accumulation); reference is f32 XLA.
    ref = _reference_forward(x, pt_params, H)
    max_abs = float(jnp.max(jnp.abs(out - ref)))
    assert bool(jnp.allclose(out, ref, atol=5e-2, rtol=5e-2)), max_abs

    print("KERNEL_OK")
</pallas_src>

<mosaic_0001>
module attributes {stable_mosaic.version = 11 : i64} {
  func.func @_transformer_kernel(%arg0: i32, %arg1: i32, %arg2: memref<1x8x32xf32, #tpu.memory_space<vmem>>, %arg3: memref<2x4x32x8xbf16, #tpu.memory_space<vmem>>, %arg4: memref<2x4x32x8xbf16, #tpu.memory_space<vmem>>, %arg5: memref<2x4x32x8xbf16, #tpu.memory_space<vmem>>, %arg6: memref<2x4x1x8xf32, #tpu.memory_space<vmem>>, %arg7: memref<2x4x1x8xf32, #tpu.memory_space<vmem>>, %arg8: memref<2x4x1x8xf32, #tpu.memory_space<vmem>>, %arg9: memref<2x4x8x32xbf16, #tpu.memory_space<vmem>>, %arg10: memref<2x1x32xf32, #tpu.memory_space<vmem>>, %arg11: memref<2x1x32xf32, #tpu.memory_space<vmem>>, %arg12: memref<2x1x32xf32, #tpu.memory_space<vmem>>, %arg13: memref<2x32x64xbf16, #tpu.memory_space<vmem>>, %arg14: memref<2x1x64xf32, #tpu.memory_space<vmem>>, %arg15: memref<2x64x32xbf16, #tpu.memory_space<vmem>>, %arg16: memref<2x1x32xf32, #tpu.memory_space<vmem>>, %arg17: memref<2x1x32xf32, #tpu.memory_space<vmem>>, %arg18: memref<2x1x32xf32, #tpu.memory_space<vmem>>, %arg19: memref<1x8x32xf32, #tpu.memory_space<vmem>>, %arg20: memref<1x8x32xf32, #tpu.memory_space<vmem>>) attributes {dimension_semantics = [#tpu.dimension_semantics<parallel>, #tpu.dimension_semantics<arbitrary>], iteration_bounds = array<i64: 2, 2>, scalar_prefetch = 0 : i64, scratch_operands = 1 : i64, tpu.core_type = #tpu.core_type<tc>, window_params = [{transform_indices = @transform_0, window_bounds = array<i64: 1, 8, 32>}, {pipeline_mode = #tpu.pipeline_mode<synchronous>, transform_indices = @transform_1, window_bounds = array<i64: 2, 4, 32, 8>}, {pipeline_mode = #tpu.pipeline_mode<synchronous>, transform_indices = @transform_2, window_bounds = array<i64: 2, 4, 32, 8>}, {pipeline_mode = #tpu.pipeline_mode<synchronous>, transform_indices = @transform_3, window_bounds = array<i64: 2, 4, 32, 8>}, {pipeline_mode = #tpu.pipeline_mode<synchronous>, transform_indices = @transform_4, window_bounds = array<i64: 2, 4, 1, 8>}, {pipeline_mode = #tpu.pipeline_mode<synchronous>, transform_indices = @transform_5, window_bounds = array<i64: 2, 4, 1, 8>}, {pipeline_mode = #tpu.pipeline_mode<synchronous>, transform_indices = @transform_6, window_bounds = array<i64: 2, 4, 1, 8>}, {pipeline_mode = #tpu.pipeline_mode<synchronous>, transform_indices = @transform_7, window_bounds = array<i64: 2, 4, 8, 32>}, {pipeline_mode = #tpu.pipeline_mode<synchronous>, transform_indices = @transform_8, window_bounds = array<i64: 2, 1, 32>}, {pipeline_mode = #tpu.pipeline_mode<synchronous>, transform_indices = @transform_9, window_bounds = array<i64: 2, 1, 32>}, {pipeline_mode = #tpu.pipeline_mode<synchronous>, transform_indices = @transform_10, window_bounds = array<i64: 2, 1, 32>}, {pipeline_mode = #tpu.pipeline_mode<synchronous>, transform_indices = @transform_11, window_bounds = array<i64: 2, 32, 64>}, {pipeline_mode = #tpu.pipeline_mode<synchronous>, transform_indices = @transform_12, window_bounds = array<i64: 2, 1, 64>}, {pipeline_mode = #tpu.pipeline_mode<synchronous>, transform_indices = @transform_13, window_bounds = array<i64: 2, 64, 32>}, {pipeline_mode = #tpu.pipeline_mode<synchronous>, transform_indices = @transform_14, window_bounds = array<i64: 2, 1, 32>}, {pipeline_mode = #tpu.pipeline_mode<synchronous>, transform_indices = @transform_15, window_bounds = array<i64: 2, 1, 32>}, {pipeline_mode = #tpu.pipeline_mode<synchronous>, transform_indices = @transform_16, window_bounds = array<i64: 2, 1, 32>}, {transform_indices = @transform_17, window_bounds = array<i64: 1, 8, 32>}]} {
    %c0_i32 = arith.constant 0 : i32
    %0 = arith.cmpi eq, %arg1, %c0_i32 : i32
    %1 = arith.extui %0 : i1 to i32
    %c0_i32_0 = arith.constant 0 : i32
    %2 = arith.cmpi ne, %1, %c0_i32_0 : i32
    scf.if %2 {
      %c0_106 = arith.constant 0 : index
      %c0_107 = arith.constant 0 : index
      %c0_108 = arith.constant 0 : index
      %334 = vector.load %arg2[%c0_106, %c0_107, %c0_108] : memref<1x8x32xf32, #tpu.memory_space<vmem>>, vector<1x8x32xf32>
      %c0_109 = arith.constant 0 : index
      %c0_110 = arith.constant 0 : index
      %c0_111 = arith.constant 0 : index
      %335 = vector.load %arg20[%c0_109, %c0_110, %c0_111] : memref<1x8x32xf32, #tpu.memory_space<vmem>>, vector<1x8x32xf32>
      tpu.vector_store %arg20[%c0_109, %c0_110, %c0_111], %334 {strides = array<i32>} : memref<1x8x32xf32, #tpu.memory_space<vmem>>, vector<1x8x32xf32>,
    } else {
    }
    %c0 = arith.constant 0 : index
    %c0_1 = arith.constant 0 : index
    %c0_2 = arith.constant 0 : index
    %3 = vector.load %arg20[%c0, %c0_1, %c0_2] : memref<1x8x32xf32, #tpu.memory_space<vmem>>, vector<1x8x32xf32>
    %4 = vector.shape_cast %3 : vector<1x8x32xf32> to vector<8x32xf32>
    %5 = arith.truncf %4 : vector<8x32xf32> to vector<8x32xbf16>
    %6 = arith.index_cast %arg1 : i32 to index
    %c0_3 = arith.constant 0 : index
    %c0_4 = arith.constant 0 : index
    %c0_5 = arith.constant 0 : index
    %7 = vector.load %arg3[%6, %c0_3, %c0_4, %c0_5] : memref<2x4x32x8xbf16, #tpu.memory_space<vmem>>, vector<1x4x32x8xbf16>
    %8 = vector.shape_cast %7 : vector<1x4x32x8xbf16> to vector<4x32x8xbf16>
    %9 = arith.index_cast %arg1 : i32 to index
    %c0_6 = arith.constant 0 : index
    %c0_7 = arith.constant 0 : index
    %c0_8 = arith.constant 0 : index
    %10 = vector.load %arg4[%9, %c0_6, %c0_7, %c0_8] : memref<2x4x32x8xbf16, #tpu.memory_space<vmem>>, vector<1x4x32x8xbf16>
    %11 = vector.shape_cast %10 : vector<1x4x32x8xbf16> to vector<4x32x8xbf16>
    %12 = arith.index_cast %arg1 : i32 to index
    %c0_9 = arith.constant 0 : index
    %c0_10 = arith.constant 0 : index
    %c0_11 = arith.constant 0 : index
    %13 = vector.load %arg5[%12, %c0_9, %c0_10, %c0_11] : memref<2x4x32x8xbf16, #tpu.memory_space<vmem>>, vector<1x4x32x8xbf16>
    %14 = vector.shape_cast %13 : vector<1x4x32x8xbf16> to vector<4x32x8xbf16>
    %15 = arith.index_cast %arg1 : i32 to index
    %c0_12 = arith.constant 0 : index
    %c0_13 = arith.constant 0 : index
    %c0_14 = arith.constant 0 : index
    %16 = vector.load %arg6[%15, %c0_12, %c0_13, %c0_14] : memref<2x4x1x8xf32, #tpu.memory_space<vmem>>, vector<1x4x1x8xf32>
    %17 = vector.shape_cast %16 : vector<1x4x1x8xf32> to vector<4x1x8xf32>
    %18 = arith.index_cast %arg1 : i32 to index
    %c0_15 = arith.constant 0 : index
    %c0_16 = arith.constant 0 : index
    %c0_17 = arith.constant 0 : index
    %19 = vector.load %arg7[%18, %c0_15, %c0_16, %c0_17] : memref<2x4x1x8xf32, #tpu.memory_space<vmem>>, vector<1x4x1x8xf32>
    %20 = vector.shape_cast %19 : vector<1x4x1x8xf32> to vector<4x1x8xf32>
    %21 = arith.index_cast %arg1 : i32 to index
    %c0_18 = arith.constant 0 : index
    %c0_19 = arith.constant 0 : index
    %c0_20 = arith.constant 0 : index
    %22 = vector.load %arg8[%21, %c0_18, %c0_19, %c0_20] : memref<2x4x1x8xf32, #tpu.memory_space<vmem>>, vector<1x4x1x8xf32>
    %23 = vector.shape_cast %22 : vector<1x4x1x8xf32> to vector<4x1x8xf32>
    %24 = arith.index_cast %arg1 : i32 to index
    %c0_21 = arith.constant 0 : index
    %c0_22 = arith.constant 0 : index
    %c0_23 = arith.constant 0 : index
    %25 = vector.load %arg9[%24, %c0_21, %c0_22, %c0_23] : memref<2x4x8x32xbf16, #tpu.memory_space<vmem>>, vector<1x4x8x32xbf16>
    %26 = vector.shape_cast %25 : vector<1x4x8x32xbf16> to vector<4x8x32xbf16>
    %27 = arith.index_cast %arg1 : i32 to index
    %c0_24 = arith.constant 0 : index
    %c0_25 = arith.constant 0 : index
    %28 = vector.load %arg10[%27, %c0_24, %c0_25] : memref<2x1x32xf32, #tpu.memory_space<vmem>>, vector<1x1x32xf32>
    %29 = vector.shape_cast %28 : vector<1x1x32xf32> to vector<1x32xf32>
    %30 = arith.index_cast %arg1 : i32 to index
    %c0_26 = arith.constant 0 : index
    %c0_27 = arith.constant 0 : index
    %31 = vector.load %arg11[%30, %c0_26, %c0_27] : memref<2x1x32xf32, #tpu.memory_space<vmem>>, vector<1x1x32xf32>
    %32 = vector.shape_cast %31 : vector<1x1x32xf32> to vector<1x32xf32>
    %33 = arith.index_cast %arg1 : i32 to index
    %c0_28 = arith.constant 0 : index
    %c0_29 = arith.constant 0 : index
    %34 = vector.load %arg12[%33, %c0_28, %c0_29] : memref<2x1x32xf32, #tpu.memory_space<vmem>>, vector<1x1x32xf32>
    %35 = vector.shape_cast %34 : vector<1x1x32xf32> to vector<1x32xf32>
    %36 = arith.index_cast %arg1 : i32 to index
    %c0_30 = arith.constant 0 : index
    %c0_31 = arith.constant 0 : index
    %37 = vector.load %arg17[%36, %c0_30, %c0_31] : memref<2x1x32xf32, #tpu.memory_space<vmem>>, vector<1x1x32xf32>
    %38 = vector.shape_cast %37 : vector<1x1x32xf32> to vector<1x32xf32>
    %39 = arith.index_cast %arg1 : i32 to index
    %c0_32 = arith.constant 0 : index
    %c0_33 = arith.constant 0 : index
    %40 = vector.load %arg18[%39, %c0_32, %c0_33] : memref<2x1x32xf32, #tpu.memory_space<vmem>>, vector<1x1x32xf32>
    %41 = vector.shape_cast %40 : vector<1x1x32xf32> to vector<1x32xf32>
    %42 = arith.index_cast %arg1 : i32 to index
    %c0_34 = arith.constant 0 : index
    %c0_35 = arith.constant 0 : index
    %43 = vector.load %arg14[%42, %c0_34, %c0_35] : memref<2x1x64xf32, #tpu.memory_space<vmem>>, vector<1x1x64xf32>
    %44 = vector.shape_cast %43 : vector<1x1x64xf32> to vector<1x64xf32>
    %45 = arith.index_cast %arg1 : i32 to index
    %c0_36 = arith.constant 0 : index
    %c0_37 = arith.constant 0 : index
    %46 = vector.load %arg16[%45, %c0_36, %c0_37] : memref<2x1x32xf32, #tpu.memory_space<vmem>>, vector<1x1x32xf32>
    %47 = vector.shape_cast %46 : vector<1x1x32xf32> to vector<1x32xf32>
    %cst = arith.constant 0.000000e+00 : f32
    %48 = vector.broadcast %cst : f32 to vector<8x32xf32>
    %49 = vector.extract_strided_slice %8 {offsets = [0, 0, 0], sizes = [1, 32, 8], strides = [1, 1, 1]} : vector<4x32x8xbf16> to vector<1x32x8xbf16>
    %50 = vector.shape_cast %49 : vector<1x32x8xbf16> to vector<32x8xbf16>
    %cst_38 = arith.constant dense<0.000000e+00> : vector<8x8xf32>
    %51 = tpu.matmul %5, %50, %cst_38 {dimension_numbers = #tpu.dot_dimension_numbers<[1], [0], [0], [1], [0, 0, 1, 1], [], []>} : vector<8x32xbf16>, vector<32x8xbf16>, vector<8x8xf32> -> vector<8x8xf32>
    %52 = vector.extract_strided_slice %17 {offsets = [0, 0, 0], sizes = [1, 1, 8], strides = [1, 1, 1]} : vector<4x1x8xf32> to vector<1x1x8xf32>
    %53 = vector.shape_cast %52 : vector<1x1x8xf32> to vector<1x8xf32>
    %54 = vector.broadcast %53 : vector<1x8xf32> to vector<8x8xf32>
    %55 = arith.addf %51, %54 : vector<8x8xf32>
    %56 = vector.extract_strided_slice %11 {offsets = [0, 0, 0], sizes = [1, 32, 8], strides = [1, 1, 1]} : vector<4x32x8xbf16> to vector<1x32x8xbf16>
    %57 = vector.shape_cast %56 : vector<1x32x8xbf16> to vector<32x8xbf16>
    %cst_39 = arith.constant dense<0.000000e+00> : vector<8x8xf32>
    %58 = tpu.matmul %5, %57, %cst_39 {dimension_numbers = #tpu.dot_dimension_numbers<[1], [0], [0], [1], [0, 0, 1, 1], [], []>} : vector<8x32xbf16>, vector<32x8xbf16>, vector<8x8xf32> -> vector<8x8xf32>
    %59 = vector.extract_strided_slice %20 {offsets = [0, 0, 0], sizes = [1, 1, 8], strides = [1, 1, 1]} : vector<4x1x8xf32> to vector<1x1x8xf32>
    %60 = vector.shape_cast %59 : vector<1x1x8xf32> to vector<1x8xf32>
    %61 = vector.broadcast %60 : vector<1x8xf32> to vector<8x8xf32>
    %62 = arith.addf %58, %61 : vector<8x8xf32>
    %63 = vector.extract_strided_slice %14 {offsets = [0, 0, 0], sizes = [1, 32, 8], strides = [1, 1, 1]} : vector<4x32x8xbf16> to vector<1x32x8xbf16>
    %64 = vector.shape_cast %63 : vector<1x32x8xbf16> to vector<32x8xbf16>
    %cst_40 = arith.constant dense<0.000000e+00> : vector<8x8xf32>
    %65 = tpu.matmul %5, %64, %cst_40 {dimension_numbers = #tpu.dot_dimension_numbers<[1], [0], [0], [1], [0, 0, 1, 1], [], []>} : vector<8x32xbf16>, vector<32x8xbf16>, vector<8x8xf32> -> vector<8x8xf32>
    %66 = vector.extract_strided_slice %23 {offsets = [0, 0, 0], sizes = [1, 1, 8], strides = [1, 1, 1]} : vector<4x1x8xf32> to vector<1x1x8xf32>
    %67 = vector.shape_cast %66 : vector<1x1x8xf32> to vector<1x8xf32>
    %68 = vector.broadcast %67 : vector<1x8xf32> to vector<8x8xf32>
    %69 = arith.addf %65, %68 : vector<8x8xf32>
    %70 = vector.shape_cast %55 : vector<8x8xf32> to vector<1x8x8xf32>
    %71 = arith.truncf %70 : vector<1x8x8xf32> to vector<1x8x8xbf16>
    %72 = vector.shape_cast %62 : vector<8x8xf32> to vector<1x8x8xf32>
    %73 = arith.truncf %72 : vector<1x8x8xf32> to vector<1x8x8xbf16>
    %74 = vector.shape_cast %69 : vector<8x8xf32> to vector<1x8x8xf32>
    %75 = arith.truncf %74 : vector<1x8x8xf32> to vector<1x8x8xbf16>
    "tpu.trace_start"() <{level = 10 : i32, message = "bqd,bkd->bqk"}> : () -> ()
    %cst_41 = arith.constant dense<0.000000e+00> : vector<1x8x8xf32>
    %76 = tpu.matmul %71, %73, %cst_41 {dimension_numbers = #tpu.dot_dimension_numbers<[2], [2], [1], [1], [0, 0, 0, 1, 1, 1], [0], [0]>} : vector<1x8x8xbf16>, vector<1x8x8xbf16>, vector<1x8x8xf32> -> vector<1x8x8xf32>
    "tpu.trace_stop"() : () -> ()
    %cst_42 = arith.constant dense<0xFF800000> : vector<1x8xf32>
    %77 = vector.multi_reduction <maximumf>, %76, %cst_42 [2] : vector<1x8x8xf32> to vector<1x8xf32>
    %78 = vector.shape_cast %77 : vector<1x8xf32> to vector<1x8x1xf32>
    %79 = vector.broadcast %78 : vector<1x8x1xf32> to vector<1x8x8xf32>
    %80 = arith.subf %76, %79 : vector<1x8x8xf32>
    %81 = math.exp %80 : vector<1x8x8xf32>
    %cst_43 = arith.constant dense<0.000000e+00> : vector<1x8xf32>
    %82 = vector.multi_reduction <add>, %81, %cst_43 [2] : vector<1x8x8xf32> to vector<1x8xf32>
    %83 = vector.shape_cast %82 : vector<1x8xf32> to vector<1x8x1xf32>
    %84 = arith.truncf %81 : vector<1x8x8xf32> to vector<1x8x8xbf16>
    "tpu.trace_start"() <{level = 10 : i32, message = "bqk,bkd->bqd"}> : () -> ()
    %cst_44 = arith.constant dense<0.000000e+00> : vector<1x8x8xf32>
    %85 = tpu.matmul %84, %75, %cst_44 {dimension_numbers = #tpu.dot_dimension_numbers<[2], [1], [1], [2], [0, 0, 0, 1, 1, 2], [0], [0]>} : vector<1x8x8xbf16>, vector<1x8x8xbf16>, vector<1x8x8xf32> -> vector<1x8x8xf32>
    "tpu.trace_stop"() : () -> ()
    %86 = vector.broadcast %83 : vector<1x8x1xf32> to vector<1x8x8xf32>
    %87 = arith.divf %85, %86 : vector<1x8x8xf32>
    %88 = vector.shape_cast %87 : vector<1x8x8xf32> to vector<8x8xf32>
    %89 = arith.truncf %88 : vector<8x8xf32> to vector<8x8xbf16>
    %90 = vector.extract_strided_slice %26 {offsets = [0, 0, 0], sizes = [1, 8, 32], strides = [1, 1, 1]} : vector<4x8x32xbf16> to vector<1x8x32xbf16>
    %91 = vector.shape_cast %90 : vector<1x8x32xbf16> to vector<8x32xbf16>
    %cst_45 = arith.constant dense<0.000000e+00> : vector<8x32xf32>
    %92 = tpu.matmul %89, %91, %cst_45 {dimension_numbers = #tpu.dot_dimension_numbers<[1], [0], [0], [1], [0, 0, 1, 1], [], []>} : vector<8x8xbf16>, vector<8x32xbf16>, vector<8x32xf32> -> vector<8x32xf32>
    %93 = arith.addf %48, %92 : vector<8x32xf32>
    %94 = vector.extract_strided_slice %8 {offsets = [1, 0, 0], sizes = [1, 32, 8], strides = [1, 1, 1]} : vector<4x32x8xbf16> to vector<1x32x8xbf16>
    %95 = vector.shape_cast %94 : vector<1x32x8xbf16> to vector<32x8xbf16>
    %cst_46 = arith.constant dense<0.000000e+00> : vector<8x8xf32>
    %96 = tpu.matmul %5, %95, %cst_46 {dimension_numbers = #tpu.dot_dimension_numbers<[1], [0], [0], [1], [0, 0, 1, 1], [], []>} : vector<8x32xbf16>, vector<32x8xbf16>, vector<8x8xf32> -> vector<8x8xf32>
    %97 = vector.extract_strided_slice %17 {offsets = [1, 0, 0], sizes = [1, 1, 8], strides = [1, 1, 1]} : vector<4x1x8xf32> to vector<1x1x8xf32>
    %98 = vector.shape_cast %97 : vector<1x1x8xf32> to vector<1x8xf32>
    %99 = vector.broadcast %98 : vector<1x8xf32> to vector<8x8xf32>
    %100 = arith.addf %96, %99 : vector<8x8xf32>
    %101 = vector.extract_strided_slice %11 {offsets = [1, 0, 0], sizes = [1, 32, 8], strides = [1, 1, 1]} : vector<4x32x8xbf16> to vector<1x32x8xbf16>
    %102 = vector.shape_cast %101 : vector<1x32x8xbf16> to vector<32x8xbf16>
    %cst_47 = arith.constant dense<0.000000e+00> : vector<8x8xf32>
    %103 = tpu.matmul %5, %102, %cst_47 {dimension_numbers = #tpu.dot_dimension_numbers<[1], [0], [0], [1], [0, 0, 1, 1], [], []>} : vector<8x32xbf16>, vector<32x8xbf16>, vector<8x8xf32> -> vector<8x8xf32>
    %104 = vector.extract_strided_slice %20 {offsets = [1, 0, 0], sizes = [1, 1, 8], strides = [1, 1, 1]} : vector<4x1x8xf32> to vector<1x1x8xf32>
    %105 = vector.shape_cast %104 : vector<1x1x8xf32> to vector<1x8xf32>
    %106 = vector.broadcast %105 : vector<1x8xf32> to vector<8x8xf32>
    %107 = arith.addf %103, %106 : vector<8x8xf32>
    %108 = vector.extract_strided_slice %14 {offsets = [1, 0, 0], sizes = [1, 32, 8], strides = [1, 1, 1]} : vector<4x32x8xbf16> to vector<1x32x8xbf16>
    %109 = vector.shape_cast %108 : vector<1x32x8xbf16> to vector<32x8xbf16>
    %cst_48 = arith.constant dense<0.000000e+00> : vector<8x8xf32>
    %110 = tpu.matmul %5, %109, %cst_48 {dimension_numbers = #tpu.dot_dimension_numbers<[1], [0], [0], [1], [0, 0, 1, 1], [], []>} : vector<8x32xbf16>, vector<32x8xbf16>, vector<8x8xf32> -> vector<8x8xf32>
    %111 = vector.extract_strided_slice %23 {offsets = [1, 0, 0], sizes = [1, 1, 8], strides = [1, 1, 1]} : vector<4x1x8xf32> to vector<1x1x8xf32>
    %112 = vector.shape_cast %111 : vector<1x1x8xf32> to vector<1x8xf32>
    %113 = vector.broadcast %112 : vector<1x8xf32> to vector<8x8xf32>
    %114 = arith.addf %110, %113 : vector<8x8xf32>
    %115 = vector.shape_cast %100 : vector<8x8xf32> to vector<1x8x8xf32>
    %116 = arith.truncf %115 : vector<1x8x8xf32> to vector<1x8x8xbf16>
    %117 = vector.shape_cast %107 : vector<8x8xf32> to vector<1x8x8xf32>
    %118 = arith.truncf %117 : vector<1x8x8xf32> to vector<1x8x8xbf16>
    %119 = vector.shape_cast %114 : vector<8x8xf32> to vector<1x8x8xf32>
    %120 = arith.truncf %119 : vector<1x8x8xf32> to vector<1x8x8xbf16>
    "tpu.trace_start"() <{level = 10 : i32, message = "bqd,bkd->bqk"}> : () -> ()
    %cst_49 = arith.constant dense<0.000000e+00> : vector<1x8x8xf32>
    %121 = tpu.matmul %116, %118, %cst_49 {dimension_numbers = #tpu.dot_dimension_numbers<[2], [2], [1], [1], [0, 0, 0, 1, 1, 1], [0], [0]>} : vector<1x8x8xbf16>, vector<1x8x8xbf16>, vector<1x8x8xf32> -> vector<1x8x8xf32>
    "tpu.trace_stop"() : () -> ()
    %cst_50 = arith.constant dense<0xFF800000> : vector<1x8xf32>
    %122 = vector.multi_reduction <maximumf>, %121, %cst_50 [2] : vector<1x8x8xf32> to vector<1x8xf32>
    %123 = vector.shape_cast %122 : vector<1x8xf32> to vector<1x8x1xf32>
    %124 = vector.broadcast %123 : vector<1x8x1xf32> to vector<1x8x8xf32>
    %125 = arith.subf %121, %124 : vector<1x8x8xf32>
    %126 = math.exp %125 : vector<1x8x8xf32>
    %cst_51 = arith.constant dense<0.000000e+00> : vector<1x8xf32>
    %127 = vector.multi_reduction <add>, %126, %cst_51 [2] : vector<1x8x8xf32> to vector<1x8xf32>
    %128 = vector.shape_cast %127 : vector<1x8xf32> to vector<1x8x1xf32>
    %129 = arith.truncf %126 : vector<1x8x8xf32> to vector<1x8x8xbf16>
    "tpu.trace_start"() <{level = 10 : i32, message = "bqk,bkd->bqd"}> : () -> ()
    %cst_52 = arith.constant dense<0.000000e+00> : vector<1x8x8xf32>
    %130 = tpu.matmul %129, %120, %cst_52 {dimension_numbers = #tpu.dot_dimension_numbers<[2], [1], [1], [2], [0, 0, 0, 1, 1, 2], [0], [0]>} : vector<1x8x8xbf16>, vector<1x8x8xbf16>, vector<1x8x8xf32> -> vector<1x8x8xf32>
    "tpu.trace_stop"() : () -> ()
    %131 = vector.broadcast %128 : vector<1x8x1xf32> to vector<1x8x8xf32>
    %132 = arith.divf %130, %131 : vector<1x8x8xf32>
    %133 = vector.shape_cast %132 : vector<1x8x8xf32> to vector<8x8xf32>
    %134 = arith.truncf %133 : vector<8x8xf32> to vector<8x8xbf16>
    %135 = vector.extract_strided_slice %26 {offsets = [1, 0, 0], sizes = [1, 8, 32], strides = [1, 1, 1]} : vector<4x8x32xbf16> to vector<1x8x32xbf16>
    %136 = vector.shape_cast %135 : vector<1x8x32xbf16> to vector<8x32xbf16>
    %cst_53 = arith.constant dense<0.000000e+00> : vector<8x32xf32>
    %137 = tpu.matmul %134, %136, %cst_53 {dimension_numbers = #tpu.dot_dimension_numbers<[1], [0], [0], [1], [0, 0, 1, 1], [], []>} : vector<8x8xbf16>, vector<8x32xbf16>, vector<8x32xf32> -> vector<8x32xf32>
    %138 = arith.addf %93, %137 : vector<8x32xf32>
    %139 = vector.extract_strided_slice %8 {offsets = [2, 0, 0], sizes = [1, 32, 8], strides = [1, 1, 1]} : vector<4x32x8xbf16> to vector<1x32x8xbf16>
    %140 = vector.shape_cast %139 : vector<1x32x8xbf16> to vector<32x8xbf16>
    %cst_54 = arith.constant dense<0.000000e+00> : vector<8x8xf32>
    %141 = tpu.matmul %5, %140, %cst_54 {dimension_numbers = #tpu.dot_dimension_numbers<[1], [0], [0], [1], [0, 0, 1, 1], [], []>} : vector<8x32xbf16>, vector<32x8xbf16>, vector<8x8xf32> -> vector<8x8xf32>
    %142 = vector.extract_strided_slice %17 {offsets = [2, 0, 0], sizes = [1, 1, 8], strides = [1, 1, 1]} : vector<4x1x8xf32> to vector<1x1x8xf32>
    %143 = vector.shape_cast %142 : vector<1x1x8xf32> to vector<1x8xf32>
    %144 = vector.broadcast %143 : vector<1x8xf32> to vector<8x8xf32>
    %145 = arith.addf %141, %144 : vector<8x8xf32>
    %146 = vector.extract_strided_slice %11 {offsets = [2, 0, 0], sizes = [1, 32, 8], strides = [1, 1, 1]} : vector<4x32x8xbf16> to vector<1x32x8xbf16>
    %147 = vector.shape_cast %146 : vector<1x32x8xbf16> to vector<32x8xbf16>
    %cst_55 = arith.constant dense<0.000000e+00> : vector<8x8xf32>
    %148 = tpu.matmul %5, %147, %cst_55 {dimension_numbers = #tpu.dot_dimension_numbers<[1], [0], [0], [1], [0, 0, 1, 1], [], []>} : vector<8x32xbf16>, vector<32x8xbf16>, vector<8x8xf32> -> vector<8x8xf32>
    %149 = vector.extract_strided_slice %20 {offsets = [2, 0, 0], sizes = [1, 1, 8], strides = [1, 1, 1]} : vector<4x1x8xf32> to vector<1x1x8xf32>
    %150 = vector.shape_cast %149 : vector<1x1x8xf32> to vector<1x8xf32>
    %151 = vector.broadcast %150 : vector<1x8xf32> to vector<8x8xf32>
    %152 = arith.addf %148, %151 : vector<8x8xf32>
    %153 = vector.extract_strided_slice %14 {offsets = [2, 0, 0], sizes = [1, 32, 8], strides = [1, 1, 1]} : vector<4x32x8xbf16> to vector<1x32x8xbf16>
    %154 = vector.shape_cast %153 : vector<1x32x8xbf16> to vector<32x8xbf16>
    %cst_56 = arith.constant dense<0.000000e+00> : vector<8x8xf32>
    %155 = tpu.matmul %5, %154, %cst_56 {dimension_numbers = #tpu.dot_dimension_numbers<[1], [0], [0], [1], [0, 0, 1, 1], [], []>} : vector<8x32xbf16>, vector<32x8xbf16>, vector<8x8xf32> -> vector<8x8xf32>
    %156 = vector.extract_strided_slice %23 {offsets = [2, 0, 0], sizes = [1, 1, 8], strides = [1, 1, 1]} : vector<4x1x8xf32> to vector<1x1x8xf32>
    %157 = vector.shape_cast %156 : vector<1x1x8xf32> to vector<1x8xf32>
    %158 = vector.broadcast %157 : vector<1x8xf32> to vector<8x8xf32>
    %159 = arith.addf %155, %158 : vector<8x8xf32>
    %160 = vector.shape_cast %145 : vector<8x8xf32> to vector<1x8x8xf32>
    %161 = arith.truncf %160 : vector<1x8x8xf32> to vector<1x8x8xbf16>
    %162 = vector.shape_cast %152 : vector<8x8xf32> to vector<1x8x8xf32>
    %163 = arith.truncf %162 : vector<1x8x8xf32> to vector<1x8x8xbf16>
    %164 = vector.shape_cast %159 : vector<8x8xf32> to vector<1x8x8xf32>
    %165 = arith.truncf %164 : vector<1x8x8xf32> to vector<1x8x8xbf16>
    "tpu.trace_start"() <{level = 10 : i32, message = "bqd,bkd->bqk"}> : () -> ()
    %cst_57 = arith.constant dense<0.000000e+00> : vector<1x8x8xf32>
    %166 = tpu.matmul %161, %163, %cst_57 {dimension_numbers = #tpu.dot_dimension_numbers<[2], [2], [1], [1], [0, 0, 0, 1, 1, 1], [0], [0]>} : vector<1x8x8xbf16>, vector<1x8x8xbf16>, vector<1x8x8xf32> -> vector<1x8x8xf32>
    "tpu.trace_stop"() : () -> ()
    %cst_58 = arith.constant dense<0xFF800000> : vector<1x8xf32>
    %167 = vector.multi_reduction <maximumf>, %166, %cst_58 [2] : vector<1x8x8xf32> to vector<1x8xf32>
    %168 = vector.shape_cast %167 : vector<1x8xf32> to vector<1x8x1xf32>
    %169 = vector.broadcast %168 : vector<1x8x1xf32> to vector<1x8x8xf32>
    %170 = arith.subf %166, %169 : vector<1x8x8xf32>
    %171 = math.exp %170 : vector<1x8x8xf32>
    %cst_59 = arith.constant dense<0.000000e+00> : vector<1x8xf32>
    %172 = vector.multi_reduction <add>, %171, %cst_59 [2] : vector<1x8x8xf32> to vector<1x8xf32>
    %173 = vector.shape_cast %172 : vector<1x8xf32> to vector<1x8x1xf32>
    %174 = arith.truncf %171 : vector<1x8x8xf32> to vector<1x8x8xbf16>
    "tpu.trace_start"() <{level = 10 : i32, message = "bqk,bkd->bqd"}> : () -> ()
    %cst_60 = arith.constant dense<0.000000e+00> : vector<1x8x8xf32>
    %175 = tpu.matmul %174, %165, %cst_60 {dimension_numbers = #tpu.dot_dimension_numbers<[2], [1], [1], [2], [0, 0, 0, 1, 1, 2], [0], [0]>} : vector<1x8x8xbf16>, vector<1x8x8xbf16>, vector<1x8x8xf32> -> vector<1x8x8xf32>
    "tpu.trace_stop"() : () -> ()
    %176 = vector.broadcast %173 : vector<1x8x1xf32> to vector<1x8x8xf32>
    %177 = arith.divf %175, %176 : vector<1x8x8xf32>
    %178 = vector.shape_cast %177 : vector<1x8x8xf32> to vector<8x8xf32>
    %179 = arith.truncf %178 : vector<8x8xf32> to vector<8x8xbf16>
    %180 = vector.extract_strided_slice %26 {offsets = [2, 0, 0], sizes = [1, 8, 32], strides = [1, 1, 1]} : vector<4x8x32xbf16> to vector<1x8x32xbf16>
    %181 = vector.shape_cast %180 : vector<1x8x32xbf16> to vector<8x32xbf16>
    %cst_61 = arith.constant dense<0.000000e+00> : vector<8x32xf32>
    %182 = tpu.matmul %179, %181, %cst_61 {dimension_numbers = #tpu.dot_dimension_numbers<[1], [0], [0], [1], [0, 0, 1, 1], [], []>} : vector<8x8xbf16>, vector<8x32xbf16>, vector<8x32xf32> -> vector<8x32xf32>
    %183 = arith.addf %138, %182 : vector<8x32xf32>
    %184 = vector.extract_strided_slice %8 {offsets = [3, 0, 0], sizes = [1, 32, 8], strides = [1, 1, 1]} : vector<4x32x8xbf16> to vector<1x32x8xbf16>
    %185 = vector.shape_cast %184 : vector<1x32x8xbf16> to vector<32x8xbf16>
    %cst_62 = arith.constant dense<0.000000e+00> : vector<8x8xf32>
    %186 = tpu.matmul %5, %185, %cst_62 {dimension_numbers = #tpu.dot_dimension_numbers<[1], [0], [0], [1], [0, 0, 1, 1], [], []>} : vector<8x32xbf16>, vector<32x8xbf16>, vector<8x8xf32> -> vector<8x8xf32>
    %187 = vector.extract_strided_slice %17 {offsets = [3, 0, 0], sizes = [1, 1, 8], strides = [1, 1, 1]} : vector<4x1x8xf32> to vector<1x1x8xf32>
    %188 = vector.shape_cast %187 : vector<1x1x8xf32> to vector<1x8xf32>
    %189 = vector.broadcast %188 : vector<1x8xf32> to vector<8x8xf32>
    %190 = arith.addf %186, %189 : vector<8x8xf32>
    %191 = vector.extract_strided_slice %11 {offsets = [3, 0, 0], sizes = [1, 32, 8], strides = [1, 1, 1]} : vector<4x32x8xbf16> to vector<1x32x8xbf16>
    %192 = vector.shape_cast %191 : vector<1x32x8xbf16> to vector<32x8xbf16>
    %cst_63 = arith.constant dense<0.000000e+00> : vector<8x8xf32>
    %193 = tpu.matmul %5, %192, %cst_63 {dimension_numbers = #tpu.dot_dimension_numbers<[1], [0], [0], [1], [0, 0, 1, 1], [], []>} : vector<8x32xbf16>, vector<32x8xbf16>, vector<8x8xf32> -> vector<8x8xf32>
    %194 = vector.extract_strided_slice %20 {offsets = [3, 0, 0], sizes = [1, 1, 8], strides = [1, 1, 1]} : vector<4x1x8xf32> to vector<1x1x8xf32>
    %195 = vector.shape_cast %194 : vector<1x1x8xf32> to vector<1x8xf32>
    %196 = vector.broadcast %195 : vector<1x8xf32> to vector<8x8xf32>
    %197 = arith.addf %193, %196 : vector<8x8xf32>
    %198 = vector.extract_strided_slice %14 {offsets = [3, 0, 0], sizes = [1, 32, 8], strides = [1, 1, 1]} : vector<4x32x8xbf16> to vector<1x32x8xbf16>
    %199 = vector.shape_cast %198 : vector<1x32x8xbf16> to vector<32x8xbf16>
    %cst_64 = arith.constant dense<0.000000e+00> : vector<8x8xf32>
    %200 = tpu.matmul %5, %199, %cst_64 {dimension_numbers = #tpu.dot_dimension_numbers<[1], [0], [0], [1], [0, 0, 1, 1], [], []>} : vector<8x32xbf16>, vector<32x8xbf16>, vector<8x8xf32> -> vector<8x8xf32>
    %201 = vector.extract_strided_slice %23 {offsets = [3, 0, 0], sizes = [1, 1, 8], strides = [1, 1, 1]} : vector<4x1x8xf32> to vector<1x1x8xf32>
    %202 = vector.shape_cast %201 : vector<1x1x8xf32> to vector<1x8xf32>
    %203 = vector.broadcast %202 : vector<1x8xf32> to vector<8x8xf32>
    %204 = arith.addf %200, %203 : vector<8x8xf32>
    %205 = vector.shape_cast %190 : vector<8x8xf32> to vector<1x8x8xf32>
    %206 = arith.truncf %205 : vector<1x8x8xf32> to vector<1x8x8xbf16>
    %207 = vector.shape_cast %197 : vector<8x8xf32> to vector<1x8x8xf32>
    %208 = arith.truncf %207 : vector<1x8x8xf32> to vector<1x8x8xbf16>
    %209 = vector.shape_cast %204 : vector<8x8xf32> to vector<1x8x8xf32>
    %210 = arith.truncf %209 : vector<1x8x8xf32> to vector<1x8x8xbf16>
    "tpu.trace_start"() <{level = 10 : i32, message = "bqd,bkd->bqk"}> : () -> ()
    %cst_65 = arith.constant dense<0.000000e+00> : vector<1x8x8xf32>
    %211 = tpu.matmul %206, %208, %cst_65 {dimension_numbers = #tpu.dot_dimension_numbers<[2], [2], [1], [1], [0, 0, 0, 1, 1, 1], [0], [0]>} : vector<1x8x8xbf16>, vector<1x8x8xbf16>, vector<1x8x8xf32> -> vector<1x8x8xf32>
    "tpu.trace_stop"() : () -> ()
    %cst_66 = arith.constant dense<0xFF800000> : vector<1x8xf32>
    %212 = vector.multi_reduction <maximumf>, %211, %cst_66 [2] : vector<1x8x8xf32> to vector<1x8xf32>
    %213 = vector.shape_cast %212 : vector<1x8xf32> to vector<1x8x1xf32>
    %214 = vector.broadcast %213 : vector<1x8x1xf32> to vector<1x8x8xf32>
    %215 = arith.subf %211, %214 : vector<1x8x8xf32>
    %216 = math.exp %215 : vector<1x8x8xf32>
    %cst_67 = arith.constant dense<0.000000e+00> : vector<1x8xf32>
    %217 = vector.multi_reduction <add>, %216, %cst_67 [2] : vector<1x8x8xf32> to vector<1x8xf32>
    %218 = vector.shape_cast %217 : vector<1x8xf32> to vector<1x8x1xf32>
    %219 = arith.truncf %216 : vector<1x8x8xf32> to vector<1x8x8xbf16>
    "tpu.trace_start"() <{level = 10 : i32, message = "bqk,bkd->bqd"}> : () -> ()
    %cst_68 = arith.constant dense<0.000000e+00> : vector<1x8x8xf32>
    %220 = tpu.matmul %219, %210, %cst_68 {dimension_numbers = #tpu.dot_dimension_numbers<[2], [1], [1], [2], [0, 0, 0, 1, 1, 2], [0], [0]>} : vector<1x8x8xbf16>, vector<1x8x8xbf16>, vector<1x8x8xf32> -> vector<1x8x8xf32>
    "tpu.trace_stop"() : () -> ()
    %221 = vector.broadcast %218 : vector<1x8x1xf32> to vector<1x8x8xf32>
    %222 = arith.divf %220, %221 : vector<1x8x8xf32>
    %223 = vector.shape_cast %222 : vector<1x8x8xf32> to vector<8x8xf32>
    %224 = arith.truncf %223 : vector<8x8xf32> to vector<8x8xbf16>
    %225 = vector.extract_strided_slice %26 {offsets = [3, 0, 0], sizes = [1, 8, 32], strides = [1, 1, 1]} : vector<4x8x32xbf16> to vector<1x8x32xbf16>
    %226 = vector.shape_cast %225 : vector<1x8x32xbf16> to vector<8x32xbf16>
    %cst_69 = arith.constant dense<0.000000e+00> : vector<8x32xf32>
    %227 = tpu.matmul %224, %226, %cst_69 {dimension_numbers = #tpu.dot_dimension_numbers<[1], [0], [0], [1], [0, 0, 1, 1], [], []>} : vector<8x8xbf16>, vector<8x32xbf16>, vector<8x32xf32> -> vector<8x32xf32>
    %228 = arith.addf %183, %227 : vector<8x32xf32>
    %229 = vector.broadcast %29 : vector<1x32xf32> to vector<8x32xf32>
    %230 = arith.addf %228, %229 : vector<8x32xf32>
    %231 = arith.addf %4, %230 : vector<8x32xf32>
    %cst_70 = arith.constant dense<0.000000e+00> : vector<8xf32>
    %232 = vector.multi_reduction <add>, %231, %cst_70 [1] : vector<8x32xf32> to vector<8xf32>
    %233 = vector.shape_cast %232 : vector<8xf32> to vector<8x1xf32>
    %cst_71 = arith.constant 3.200000e+01 : f32
    %234 = vector.broadcast %cst_71 : f32 to vector<8x1xf32>
    %235 = arith.divf %233, %234 : vector<8x1xf32>
    %236 = vector.broadcast %235 : vector<8x1xf32> to vector<8x32xf32>
    %237 = arith.subf %231, %236 : vector<8x32xf32>
    %238 = arith.mulf %237, %237 : vector<8x32xf32>
    %cst_72 = arith.constant dense<0.000000e+00> : vector<8xf32>
    %239 = vector.multi_reduction <add>, %238, %cst_72 [1] : vector<8x32xf32> to vector<8xf32>
    %240 = vector.shape_cast %239 : vector<8xf32> to vector<8x1xf32>
    %cst_73 = arith.constant 3.200000e+01 : f32
    %241 = vector.broadcast %cst_73 : f32 to vector<8x1xf32>
    %242 = arith.divf %240, %241 : vector<8x1xf32>
    %cst_74 = arith.constant 9.99999974E-6 : f32
    %243 = vector.broadcast %cst_74 : f32 to vector<8x1xf32>
    %244 = arith.addf %242, %243 : vector<8x1xf32>
    %245 = math.rsqrt %244 : vector<8x1xf32>
    %246 = vector.broadcast %245 : vector<8x1xf32> to vector<8x32xf32>
    %247 = arith.mulf %237, %246 : vector<8x32xf32>
    %248 = vector.broadcast %32 : vector<1x32xf32> to vector<8x32xf32>
    %249 = arith.mulf %247, %248 : vector<8x32xf32>
    %250 = vector.broadcast %35 : vector<1x32xf32> to vector<8x32xf32>
    %251 = arith.addf %249, %250 : vector<8x32xf32>
    %252 = arith.truncf %251 : vector<8x32xf32> to vector<8x32xbf16>
    %253 = arith.index_cast %arg1 : i32 to index
    %c0_75 = arith.constant 0 : index
    %c0_76 = arith.constant 0 : index
    %254 = vector.load %arg13[%253, %c0_75, %c0_76] : memref<2x32x64xbf16, #tpu.memory_space<vmem>>, vector<1x32x64xbf16>
    %255 = vector.shape_cast %254 : vector<1x32x64xbf16> to vector<32x64xbf16>
    %256 = arith.index_cast %arg1 : i32 to index
    %c0_77 = arith.constant 0 : index
    %c0_78 = arith.constant 0 : index
    %257 = vector.load %arg15[%256, %c0_77, %c0_78] : memref<2x64x32xbf16, #tpu.memory_space<vmem>>, vector<1x64x32xbf16>
    %258 = vector.shape_cast %257 : vector<1x64x32xbf16> to vector<64x32xbf16>
    %cst_79 = arith.constant 0.000000e+00 : f32
    %259 = vector.broadcast %cst_79 : f32 to vector<8x32xf32>
    %cst_80 = arith.constant dense<0.000000e+00> : vector<8x64xf32>
    %260 = tpu.matmul %252, %255, %cst_80 {dimension_numbers = #tpu.dot_dimension_numbers<[1], [0], [0], [1], [0, 0, 1, 1], [], []>} : vector<8x32xbf16>, vector<32x64xbf16>, vector<8x64xf32> -> vector<8x64xf32>
    %261 = vector.broadcast %44 : vector<1x64xf32> to vector<8x64xf32>
    %262 = arith.addf %260, %261 : vector<8x64xf32>
    %cst_81 = arith.constant 5.000000e-01 : f32
    %263 = vector.broadcast %cst_81 : f32 to vector<8x64xf32>
    %264 = arith.mulf %263, %262 : vector<8x64xf32>
    %cst_82 = arith.constant 0.707106769 : f32
    %265 = vector.broadcast %cst_82 : f32 to vector<8x64xf32>
    %266 = arith.mulf %262, %265 : vector<8x64xf32>
    %267 = math.absf %266 : vector<8x64xf32>
    %cst_83 = arith.constant 0.327591091 : f32
    %268 = vector.broadcast %cst_83 : f32 to vector<8x64xf32>
    %269 = arith.mulf %268, %267 : vector<8x64xf32>
    %cst_84 = arith.constant 1.000000e+00 : f32
    %270 = vector.broadcast %cst_84 : f32 to vector<8x64xf32>
    %271 = arith.addf %270, %269 : vector<8x64xf32>
    %cst_85 = arith.constant 1.000000e+00 : f32
    %272 = vector.broadcast %cst_85 : f32 to vector<8x64xf32>
    %273 = arith.divf %272, %271 : vector<8x64xf32>
    %cst_86 = arith.constant 1.06140542 : f32
    %274 = vector.broadcast %cst_86 : f32 to vector<8x64xf32>
    %275 = arith.mulf %273, %274 : vector<8x64xf32>
    %cst_87 = arith.constant -1.45315206 : f32
    %276 = vector.broadcast %cst_87 : f32 to vector<8x64xf32>
    %277 = arith.addf %276, %275 : vector<8x64xf32>
    %278 = arith.mulf %273, %277 : vector<8x64xf32>
    %cst_88 = arith.constant 1.42141378 : f32
    %279 = vector.broadcast %cst_88 : f32 to vector<8x64xf32>
    %280 = arith.addf %279, %278 : vector<8x64xf32>
    %281 = arith.mulf %273, %280 : vector<8x64xf32>
    %cst_89 = arith.constant -0.284496725 : f32
    %282 = vector.broadcast %cst_89 : f32 to vector<8x64xf32>
    %283 = arith.addf %282, %281 : vector<8x64xf32>
    %284 = arith.mulf %273, %283 : vector<8x64xf32>
    %cst_90 = arith.constant 0.254829586 : f32
    %285 = vector.broadcast %cst_90 : f32 to vector<8x64xf32>
    %286 = arith.addf %285, %284 : vector<8x64xf32>
    %287 = arith.mulf %273, %286 : vector<8x64xf32>
    %cst_91 = arith.constant 0.000000e+00 : f32
    %288 = vector.broadcast %cst_91 : f32 to vector<8x64xf32>
    %289 = arith.subf %288, %267 : vector<8x64xf32>
    %290 = arith.mulf %289, %267 : vector<8x64xf32>
    %291 = math.exp %290 : vector<8x64xf32>
    %292 = arith.mulf %287, %291 : vector<8x64xf32>
    %cst_92 = arith.constant 1.000000e+00 : f32
    %293 = vector.broadcast %cst_92 : f32 to vector<8x64xf32>
    %294 = arith.subf %293, %292 : vector<8x64xf32>
    %cst_93 = arith.constant 0.000000e+00 : f32
    %295 = vector.broadcast %cst_93 : f32 to vector<8x64xf32>
    %296 = arith.cmpf oge, %266, %295 : vector<8x64xf32>
    %cst_94 = arith.constant 0.000000e+00 : f32
    %297 = vector.broadcast %cst_94 : f32 to vector<8x64xf32>
    %298 = arith.subf %297, %294 : vector<8x64xf32>
    %299 = arith.select %296, %294, %298 : vector<8x64xi1>, vector<8x64xf32>
    %cst_95 = arith.constant 1.000000e+00 : f32
    %300 = vector.broadcast %cst_95 : f32 to vector<8x64xf32>
    %301 = arith.addf %300, %299 : vector<8x64xf32>
    %302 = arith.mulf %264, %301 : vector<8x64xf32>
    %303 = arith.truncf %302 : vector<8x64xf32> to vector<8x64xbf16>
    %cst_96 = arith.constant dense<0.000000e+00> : vector<8x32xf32>
    %304 = tpu.matmul %303, %258, %cst_96 {dimension_numbers = #tpu.dot_dimension_numbers<[1], [0], [0], [1], [0, 0, 1, 1], [], []>} : vector<8x64xbf16>, vector<64x32xbf16>, vector<8x32xf32> -> vector<8x32xf32>
    %305 = arith.addf %259, %304 : vector<8x32xf32>
    %306 = vector.broadcast %47 : vector<1x32xf32> to vector<8x32xf32>
    %307 = arith.addf %305, %306 : vector<8x32xf32>
    %308 = arith.addf %251, %307 : vector<8x32xf32>
    %cst_97 = arith.constant dense<0.000000e+00> : vector<8xf32>
    %309 = vector.multi_reduction <add>, %308, %cst_97 [1] : vector<8x32xf32> to vector<8xf32>
    %310 = vector.shape_cast %309 : vector<8xf32> to vector<8x1xf32>
    %cst_98 = arith.constant 3.200000e+01 : f32
    %311 = vector.broadcast %cst_98 : f32 to vector<8x1xf32>
    %312 = arith.divf %310, %311 : vector<8x1xf32>
    %313 = vector.broadcast %312 : vector<8x1xf32> to vector<8x32xf32>
    %314 = arith.subf %308, %313 : vector<8x32xf32>
    %315 = arith.mulf %314, %314 : vector<8x32xf32>
    %cst_99 = arith.constant dense<0.000000e+00> : vector<8xf32>
    %316 = vector.multi_reduction <add>, %315, %cst_99 [1] : vector<8x32xf32> to vector<8xf32>
    %317 = vector.shape_cast %316 : vector<8xf32> to vector<8x1xf32>
    %cst_100 = arith.constant 3.200000e+01 : f32
    %318 = vector.broadcast %cst_100 : f32 to vector<8x1xf32>
    %319 = arith.divf %317, %318 : vector<8x1xf32>
    %cst_101 = arith.constant 9.99999974E-6 : f32
    %320 = vector.broadcast %cst_101 : f32 to vector<8x1xf32>
    %321 = arith.addf %319, %320 : vector<8x1xf32>
    %322 = math.rsqrt %321 : vector<8x1xf32>
    %323 = vector.broadcast %322 : vector<8x1xf32> to vector<8x32xf32>
    %324 = arith.mulf %314, %323 : vector<8x32xf32>
    %325 = vector.broadcast %38 : vector<1x32xf32> to vector<8x32xf32>
    %326 = arith.mulf %324, %325 : vector<8x32xf32>
    %327 = vector.broadcast %41 : vector<1x32xf32> to vector<8x32xf32>
    %328 = arith.addf %326, %327 : vector<8x32xf32>
    %329 = vector.shape_cast %328 : vector<8x32xf32> to vector<1x8x32xf32>
    %c0_102 = arith.constant 0 : index
    %c0_103 = arith.constant 0 : index
    %c0_104 = arith.constant 0 : index
    %330 = vector.load %arg20[%c0_102, %c0_103, %c0_104] : memref<1x8x32xf32, #tpu.memory_space<vmem>>, vector<1x8x32xf32>
    tpu.vector_store %arg20[%c0_102, %c0_103, %c0_104], %329 {strides = array<i32>} : memref<1x8x32xf32, #tpu.memory_space<vmem>>, vector<1x8x32xf32>,
    %c1_i32 = arith.constant 1 : i32
    %331 = arith.cmpi eq, %arg1, %c1_i32 : i32
    %332 = arith.extui %331 : i1 to i32
    %c0_i32_105 = arith.constant 0 : i32
    %333 = arith.cmpi ne, %332, %c0_i32_105 : i32
    scf.if %333 {
      %334 = vector.shape_cast %328 : vector<8x32xf32> to vector<1x8x32xf32>
      %c0_106 = arith.constant 0 : index
      %c0_107 = arith.constant 0 : index
      %c0_108 = arith.constant 0 : index
      %335 = vector.load %arg19[%c0_106, %c0_107, %c0_108] : memref<1x8x32xf32, #tpu.memory_space<vmem>>, vector<1x8x32xf32>
      tpu.vector_store %arg19[%c0_106, %c0_107, %c0_108], %334 {strides = array<i32>} : memref<1x8x32xf32, #tpu.memory_space<vmem>>, vector<1x8x32xf32>,
    } else {
    }
    return
  }
  func.func @transform_0(%arg0: i32, %arg1: i32) -> (i32, i32, i32) {
    %c0_i32 = arith.constant 0 : i32
    %c0_i32_0 = arith.constant 0 : i32
    %c0_i32_1 = arith.constant 0 : i32
    return %arg0, %c0_i32, %c0_i32_0 : i32, i32, i32
  }
  func.func @transform_1(%arg0: i32, %arg1: i32) -> (i32, i32, i32, i32) {
    %c0_i32 = arith.constant 0 : i32
    %c0_i32_0 = arith.constant 0 : i32
    %c0_i32_1 = arith.constant 0 : i32
    %c0_i32_2 = arith.constant 0 : i32
    %c0_i32_3 = arith.constant 0 : i32
    return %c0_i32, %c0_i32_0, %c0_i32_1, %c0_i32_2 : i32, i32, i32, i32
  }
  func.func @transform_2(%arg0: i32, %arg1: i32) -> (i32, i32, i32, i32) {
    %c0_i32 = arith.constant 0 : i32
    %c0_i32_0 = arith.constant 0 : i32
    %c0_i32_1 = arith.constant 0 : i32
    %c0_i32_2 = arith.constant 0 : i32
    %c0_i32_3 = arith.constant 0 : i32
    return %c0_i32, %c0_i32_0, %c0_i32_1, %c0_i32_2 : i32, i32, i32, i32
  }
  func.func @transform_3(%arg0: i32, %arg1: i32) -> (i32, i32, i32, i32) {
    %c0_i32 = arith.constant 0 : i32
    %c0_i32_0 = arith.constant 0 : i32
    %c0_i32_1 = arith.constant 0 : i32
    %c0_i32_2 = arith.constant 0 : i32
    %c0_i32_3 = arith.constant 0 : i32
    return %c0_i32, %c0_i32_0, %c0_i32_1, %c0_i32_2 : i32, i32, i32, i32
  }
  func.func @transform_4(%arg0: i32, %arg1: i32) -> (i32, i32, i32, i32) {
    %c0_i32 = arith.constant 0 : i32
    %c0_i32_0 = arith.constant 0 : i32
    %c0_i32_1 = arith.constant 0 : i32
    %c0_i32_2 = arith.constant 0 : i32
    %c0_i32_3 = arith.constant 0 : i32
    return %c0_i32, %c0_i32_0, %c0_i32_1, %c0_i32_2 : i32, i32, i32, i32
  }
  func.func @transform_5(%arg0: i32, %arg1: i32) -> (i32, i32, i32, i32) {
    %c0_i32 = arith.constant 0 : i32
    %c0_i32_0 = arith.constant 0 : i32
    %c0_i32_1 = arith.constant 0 : i32
    %c0_i32_2 = arith.constant 0 : i32
    %c0_i32_3 = arith.constant 0 : i32
    return %c0_i32, %c0_i32_0, %c0_i32_1, %c0_i32_2 : i32, i32, i32, i32
  }
  func.func @transform_6(%arg0: i32, %arg1: i32) -> (i32, i32, i32, i32) {
    %c0_i32 = arith.constant 0 : i32
    %c0_i32_0 = arith.constant 0 : i32
    %c0_i32_1 = arith.constant 0 : i32
    %c0_i32_2 = arith.constant 0 : i32
    %c0_i32_3 = arith.constant 0 : i32
    return %c0_i32, %c0_i32_0, %c0_i32_1, %c0_i32_2 : i32, i32, i32, i32
  }
  func.func @transform_7(%arg0: i32, %arg1: i32) -> (i32, i32, i32, i32) {
    %c0_i32 = arith.constant 0 : i32
    %c0_i32_0 = arith.constant 0 : i32
    %c0_i32_1 = arith.constant 0 : i32
    %c0_i32_2 = arith.constant 0 : i32
    %c0_i32_3 = arith.constant 0 : i32
    return %c0_i32, %c0_i32_0, %c0_i32_1, %c0_i32_2 : i32, i32, i32, i32
  }
  func.func @transform_8(%arg0: i32, %arg1: i32) -> (i32, i32, i32) {
    %c0_i32 = arith.constant 0 : i32
    %c0_i32_0 = arith.constant 0 : i32
    %c0_i32_1 = arith.constant 0 : i32
    %c0_i32_2 = arith.constant 0 : i32
    return %c0_i32, %c0_i32_0, %c0_i32_1 : i32, i32, i32
  }
  func.func @transform_9(%arg0: i32, %arg1: i32) -> (i32, i32, i32) {
    %c0_i32 = arith.constant 0 : i32
    %c0_i32_0 = arith.constant 0 : i32
    %c0_i32_1 = arith.constant 0 : i32
    %c0_i32_2 = arith.constant 0 : i32
    return %c0_i32, %c0_i32_0, %c0_i32_1 : i32, i32, i32
  }
  func.func @transform_10(%arg0: i32, %arg1: i32) -> (i32, i32, i32) {
    %c0_i32 = arith.constant 0 : i32
    %c0_i32_0 = arith.constant 0 : i32
    %c0_i32_1 = arith.constant 0 : i32
    %c0_i32_2 = arith.constant 0 : i32
    return %c0_i32, %c0_i32_0, %c0_i32_1 : i32, i32, i32
  }
  func.func @transform_11(%arg0: i32, %arg1: i32) -> (i32, i32, i32) {
    %c0_i32 = arith.constant 0 : i32
    %c0_i32_0 = arith.constant 0 : i32
    %c0_i32_1 = arith.constant 0 : i32
    %c0_i32_2 = arith.constant 0 : i32
    return %c0_i32, %c0_i32_0, %c0_i32_1 : i32, i32, i32
  }
  func.func @transform_12(%arg0: i32, %arg1: i32) -> (i32, i32, i32) {
    %c0_i32 = arith.constant 0 : i32
    %c0_i32_0 = arith.constant 0 : i32
    %c0_i32_1 = arith.constant 0 : i32
    %c0_i32_2 = arith.constant 0 : i32
    return %c0_i32, %c0_i32_0, %c0_i32_1 : i32, i32, i32
  }
  func.func @transform_13(%arg0: i32, %arg1: i32) -> (i32, i32, i32) {
    %c0_i32 = arith.constant 0 : i32
    %c0_i32_0 = arith.constant 0 : i32
    %c0_i32_1 = arith.constant 0 : i32
    %c0_i32_2 = arith.constant 0 : i32
    return %c0_i32, %c0_i32_0, %c0_i32_1 : i32, i32, i32
  }
  func.func @transform_14(%arg0: i32, %arg1: i32) -> (i32, i32, i32) {
    %c0_i32 = arith.constant 0 : i32
    %c0_i32_0 = arith.constant 0 : i32
    %c0_i32_1 = arith.constant 0 : i32
    %c0_i32_2 = arith.constant 0 : i32
    return %c0_i32, %c0_i32_0, %c0_i32_1 : i32, i32, i32
  }
  func.func @transform_15(%arg0: i32, %arg1: i32) -> (i32, i32, i32) {
    %c0_i32 = arith.constant 0 : i32
    %c0_i32_0 = arith.constant 0 : i32
    %c0_i32_1 = arith.constant 0 : i32
    %c0_i32_2 = arith.constant 0 : i32
    return %c0_i32, %c0_i32_0, %c0_i32_1 : i32, i32, i32
  }
  func.func @transform_16(%arg0: i32, %arg1: i32) -> (i32, i32, i32) {
    %c0_i32 = arith.constant 0 : i32
    %c0_i32_0 = arith.constant 0 : i32
    %c0_i32_1 = arith.constant 0 : i32
    %c0_i32_2 = arith.constant 0 : i32
    return %c0_i32, %c0_i32_0, %c0_i32_1 : i32, i32, i32
  }
  func.func @transform_17(%arg0: i32, %arg1: i32) -> (i32, i32, i32) {
    %c0_i32 = arith.constant 0 : i32
    %c0_i32_0 = arith.constant 0 : i32
    %c0_i32_1 = arith.constant 0 : i32
    return %arg0, %c0_i32, %c0_i32_0 : i32, i32, i32
  }
}

</mosaic_0001>

<bundles_post_ra>
// kernel: tpu_custom_call.1
= control target key start
LH: loop header
LB: loop body
LE: loop exit
PB: predicated region body
PF: predicated region fallthrough
CT: control target
= control target key end

     0   :  { %s5047_s0 = inlined_call_operand.hbm [shape: f32[2,8,32], index: 0, kind: input, shape index: {}]   ;;  %s5048_s1 = inlined_call_operand.hbm [shape: bf16[2,4,32,8], index: 1, kind: input, shape index: {}]   ;;  %s5049_s2 = inlined_call_operand.hbm [shape: bf16[2,4,32,8], index: 2, kind: input, shape index: {}]   ;;  %s5050_s3 = inlined_call_operand.hbm [shape: bf16[2,4,32,8], index: 3, kind: input, shape index: {}]   ;;  %s5051_s4 = inlined_call_operand.hbm [shape: f32[2,4,1,8], index: 4, kind: input, shape index: {}]   ;;  %s5052_s5 = inlined_call_operand.hbm [shape: f32[2,4,1,8], index: 5, kind: input, shape index: {}]   ;;  %s5053_s6 = inlined_call_operand.hbm [shape: f32[2,4,1,8], index: 6, kind: input, shape index: {}]   ;;  %s5054_s7 = inlined_call_operand.hbm [shape: bf16[2,4,8,32], index: 7, kind: input, shape index: {}]   ;;  %s5055_s8 = inlined_call_operand.hbm [shape: f32[2,1,32], index: 8, kind: input, shape index: {}]   ;;  %s5056_s9 = inlined_call_operand.hbm [shape: f32[2,1,32], index: 9, kind: input, shape index: {}]   ;;  %s5057_s10 = inlined_call_operand.hbm [shape: f32[2,1,32], index: 10, kind: input, shape index: {}]   ;;  %s5058_s11 = inlined_call_operand.hbm [shape: bf16[2,32,64], index: 11, kind: input, shape index: {}]   ;;  %s5059_s12 = inlined_call_operand.hbm [shape: f32[2,1,64], index: 12, kind: input, shape index: {}]   ;;  %s5060_s13 = inlined_call_operand.hbm [shape: bf16[2,64,32], index: 13, kind: input, shape index: {}]   ;;  %s5061_s14 = inlined_call_operand.hbm [shape: f32[2,1,32], index: 14, kind: input, shape index: {}]   ;;  %s5062_s15 = inlined_call_operand.hbm [shape: f32[2,1,32], index: 15, kind: input, shape index: {}]   ;;  %s5063_s16 = inlined_call_operand.hbm [shape: f32[2,1,32], index: 16, kind: input, shape index: {}]   ;;  %s5064_s17 = inlined_call_operand.hbm [shape: f32[2,8,32], index: 17, kind: output, shape index: {}]  }
   0x1   :  { %5090 = sst [smem:[#allocation50_spill]] %s5047_s0 }
   0x2   :  { %5091 = sst [smem:[#allocation51_spill]] %s5048_s1 }
   0x3   :  { %5092 = sst [smem:[#allocation52_spill]] %s5049_s2 }
   0x4   :  { %5093 = sst [smem:[#allocation53_spill]] %s5050_s3 }
   0x5   :  { %5094 = sst [smem:[#allocation54_spill]] %s5051_s4 }
   0x6   :  { %5095 = sst [smem:[#allocation55_spill]] %s5052_s5 }
   0x7   :  { %5096 = sst [smem:[#allocation56_spill]] %s5053_s6 }
   0x8   :  { %5097 = sst [smem:[#allocation57_spill]] %s5063_s16 }
   0x9   :  { %5098 = sst [smem:[#allocation58_spill]] %s5064_s17 }
   0xa   :  { %22 = vsyncpa [#allocation4], 0 }
   0xb   :  { %24 = vsyncpa [#allocation4 + $0x1], 0 }
   0xc   :  { %25 = vsyncpa [#allocation7], 0 }
   0xd   :  { %26 = vsyncpa [#allocation10], 0 }
   0xe   :  { %27 = vsyncpa [#allocation13], 0 }
   0xf   :  { %28 = vsyncpa [#allocation16], 0 }
  0x10   :  { %29 = vsyncpa [#allocation19], 0 }
  0x11   :  { %30 = vsyncpa [#allocation22], 0 }
  0x12   :  { %31 = vsyncpa [#allocation25], 0 }
  0x13   :  { %32 = vsyncpa [#allocation28], 0 }
  0x14   :  { %33 = vsyncpa [#allocation5], 0 }
  0x15   :  { %35 = vsyncpa [#allocation5 + $0x1], 0  ;;  %s4168_s24 = smov 0   ;;  %s4170_s25 = smov 0  }
  0x16   :  { %s4172_s26 = smov 0   ;;  %s4174_s27 = smov 0  }
  0x17   :  { %s4176_s28 = smov 0   ;;  %s4178_s29 = smov 0  }
  0x18   :  { %s4180_s0 = smov 0   ;;  %s4182_s30 = smov 0  }
  0x19 LB: > { %5099 = sst [smem:[#allocation41_spill]] %s4024_s24  ;;  %s5067_s18 = sadd.s32 4294967295, %s4052_s30   ;;  %s4052_s30 = sphi %s4182_s30, %s41_s30   ;;  %s4048_s0 = sphi %s4180_s0, %s5157_s0   ;;  %s4044_s29 = sphi %s4178_s29, %s5156_s29   ;;  %s4040_s28 = sphi %s4176_s28, %s5154_s28   ;;  %s4036_s27 = sphi %s4174_s27, %s5153_s27   ;;  %s4032_s26 = sphi %s4172_s26, %s5155_s26   ;;  %s4028_s25 = sphi %s4170_s25, %s5152_s25   ;;  %s4024_s24 = sphi %s4168_s24, %s5151_s24  }
  0x1a   : > { %5100 = sst [smem:[#allocation42_spill]] %s4028_s25  ;;  %p2754_p0 = scmp.ge.s32.totalorder %s4052_s30, 1 }
  0x1b   : > { %5101 = sst [smem:[#allocation43_spill]] %s4032_s26  ;;  %p4212_p1 = scmp.eq.s32.totalorder %s5067_s18, 0 }
  0x1c   : > { %5102 = sst [smem:[#allocation44_spill]] %s4036_s27  ;;  %p446_p2 = scmp.lt.s32.totalorder %s4052_s30, 5 }
  0x1d   : > { %5103 = sst [smem:[#allocation45_spill]] %s4040_s28  ;;  %s4054_s20 = smov [#allocation6]  }
  0x1e   : > { %5104 = sst [smem:[#allocation46_spill]] %s4044_s29  ;;  %p4217_p3 = pnand %p2754_p0, %p446_p2 }
  0x1f   : > { %5105 = sst [smem:[#allocation47_spill]] %s4048_s0  ;;  %s458_s21 = sshll.u32 %s4054_s20, 4  ;;  %s459_s21 = int_to_ptr.vmem [resolvable:$true] %s458_s21 }
  0x20   : > { %s5106_s19 = scalar_select %p4212_p1, 1, 0 }
  0x21   : > { %s5108_s1 = scalar_select %p4217_p3, 1, 0 }
  0x22   : > { %5107 = sst [smem:[#allocation48_spill]] %s5106_s19  ;;  %p3213_p4 = pneg %p4217_p3 }
  0x23   : > { %5109 = sst [smem:[#allocation49_spill]] %s5108_s1  ;;  %s4055_s23 = smov [#allocation9]  }
  0x24   : > { %p4225_p5 = pnand %p3213_p4, %p4212_p1  ;;  %s484_s18 = sshll.u32 %s4055_s23, 4  ;;  %s4229_s18 = int_to_ptr.vmem [resolvable:$true] %s484_s18 }
  0x25   : > { %s5111_s27 = sld [smem:[#allocation51_spill]] }
  0x26   : > { %p4239_p7 = pneg %p4225_p5 }
  0x2b   : > { %s5112_s16 = smov %s5111_s27  ;;  %s3444_s24 = scalar_lea.hbm %s5111_s27, 2048 }
  0x2c   : > { %p3445_p6 = scmp.ne.s32.totalorder %s5112_s16, %s3444_s24  ;;  %p3451_p10 = scmp.lt.u32.totalorder %s3444_s24, %s5112_s16 }
  0x2e   : > { %p3447_p8 = pnand %p4239_p7, %p3445_p6 }
  0x30   : > { %p3448_p9 = pneg %p3447_p8 }
  0x32   : > { %p3453_p11 = pnand %p3451_p10, %p3448_p9 }
  0x34   : > { %3456 = shalt.err (!%p3453_p11)
}
  0x35   : > { %s3457_s17 = scalar_lea.vmem %s459_s21, 2048  ;;  %p3465_p2 = scmp.lt.s32.totalorder %s459_s21, %s459_s21 }
  0x36   : > { %p3458_p12 = scmp.ne.s32.totalorder %s459_s21, %s3457_s17  ;;  %p3466_p4 = scmp.lt.s32.totalorder %s3457_s17, %s3457_s17 }
  0x38   : > { %p3460_p13 = pnand %p3458_p12, %p4239_p7  ;;  %p3467_p3 = por %p3466_p4, %p3465_p2 }
  0x3a   : > { %p3461_p0 = pneg %p3460_p13 }
  0x3c   : > { %p3468_p1 = pnand %p3467_p3, %p3461_p0 }
  0x3e   : > { %3471 = shalt.err (!%p3468_p1)
}
  0x3f   : > { %s5081_s25 = smov 64   ;;  %s5087_s26 = smov 4  }
  0x40   : > { %3216 = dma.hbm_to_vmem [thread:$0]  (!%p4225_p5), %s5112_s16, 2048, %s459_s21, [#allocation7], %s5081_s25, %s5081_s25, %s5087_s26  }
  0x41   : > { %s5114_s3 = sld [smem:[#allocation53_spill]] }
  0x47   : > { %s3472_s23 = scalar_lea.hbm %s5114_s3, 2048 }
  0x48   : > { %p3473_p1 = scmp.ne.s32.totalorder %s5114_s3, %s3472_s23  ;;  %p3479_p8 = scmp.lt.u32.totalorder %s3472_s23, %s5114_s3 }
  0x4a   : > { %p3475_p3 = pnand %p3473_p1, %p4239_p7 }
  0x4c   : > { %p3476_p6 = pneg %p3475_p3 }
  0x4e   : > { %p3481_p9 = pnand %p3479_p8, %p3476_p6 }
  0x50   : > { %3484 = shalt.err (!%p3481_p9)
}
  0x51   : > { %s3485_s21 = scalar_lea.vmem %s4229_s18, 2048  ;;  %p3493_p13 = scmp.lt.s32.totalorder %s4229_s18, %s4229_s18 }
  0x52   : > { %p3486_p10 = scmp.ne.s32.totalorder %s4229_s18, %s3485_s21  ;;  %p3494_p0 = scmp.lt.s32.totalorder %s3485_s21, %s3485_s21 }
  0x54   : > { %p3488_p11 = pnand %p3486_p10, %p4239_p7  ;;  %p3495_p2 = por %p3494_p0, %p3493_p13 }
  0x56   : > { %p3489_p12 = pneg %p3488_p11 }
  0x58   : > { %p3496_p4 = pnand %p3495_p2, %p3489_p12 }
  0x5a   : > { %3499 = shalt.err (!%p3496_p4)
}
  0x5b   : > { %3222 = dma.hbm_to_vmem [thread:$0]  (!%p4225_p5), %s5114_s3, 2048, %s4229_s18, [#allocation10], %s5081_s25, %s5081_s25, %s5087_s26  }
  0x5c   : > { %s4058_s19 = smov [#allocation12]   ;;  %s4059_s27 = smov [#allocation15]  }
  0x5d   : > { %s510_s24 = sshll.u32 %s4058_s19, 4  ;;  %s536_s28 = sshll.u32 %s4059_s27, 4  ;;  %s511_s24 = int_to_ptr.vmem [resolvable:$true] %s510_s24  ;;  %s4284_s28 = int_to_ptr.vmem [resolvable:$true] %s536_s28 }
  0x5e   : > { %s5115_s5 = sld [smem:[#allocation55_spill]] }
  0x64   : > { %s3500_s17 = scalar_lea.hbm %s5115_s5, 128 }
  0x65   : > { %p3501_p1 = scmp.ne.s32.totalorder %s5115_s5, %s3500_s17  ;;  %p3507_p8 = scmp.lt.u32.totalorder %s3500_s17, %s5115_s5 }
  0x67   : > { %p3503_p3 = pnand %p3501_p1, %p4239_p7 }
  0x69   : > { %p3504_p6 = pneg %p3503_p3 }
  0x6b   : > { %p3509_p9 = pnand %p3507_p8, %p3504_p6 }
  0x6d   : > { %3512 = shalt.err (!%p3509_p9)
}
  0x6e   : > { %s3513_s0 = scalar_lea.vmem %s511_s24, 128  ;;  %p3521_p13 = scmp.lt.s32.totalorder %s511_s24, %s511_s24 }
  0x6f   : > { %p3514_p10 = scmp.ne.s32.totalorder %s511_s24, %s3513_s0  ;;  %p3522_p0 = scmp.lt.s32.totalorder %s3513_s0, %s3513_s0 }
  0x71   : > { %p3516_p11 = pnand %p3514_p10, %p4239_p7  ;;  %p3523_p2 = por %p3522_p0, %p3521_p13 }
  0x73   : > { %p3517_p12 = pneg %p3516_p11 }
  0x75   : > { %p3524_p4 = pnand %p3523_p2, %p3517_p12 }
  0x77   : > { %3527 = shalt.err (!%p3524_p4)
}
  0x78   : > { %s5083_s16 = smov 16   ;;  %s5085_s19 = smov 1  }
  0x79   : > { %3228 = dma.hbm_to_vmem [thread:$0]  (!%p4225_p5), %s5115_s5, 128, %s511_s24, [#allocation13], %s5083_s16, %s5083_s16, %s5085_s19  }
  0x7a   : > { %s3528_s21 = scalar_lea.hbm %s5054_s7, 512 }
  0x7b   : > { %p3529_p1 = scmp.ne.s32.totalorder %s5054_s7, %s3528_s21  ;;  %p3535_p8 = scmp.lt.u32.totalorder %s3528_s21, %s5054_s7 }
  0x7d   : > { %p3531_p3 = pnand %p3529_p1, %p4239_p7 }
  0x7f   : > { %p3532_p6 = pneg %p3531_p3 }
  0x81   : > { %p3537_p9 = pnand %p3535_p8, %p3532_p6 }
  0x83   : > { %3540 = shalt.err (!%p3537_p9)
}
  0x84   : > { %s3541_s24 = scalar_lea.vmem %s4284_s28, 512  ;;  %p3549_p13 = scmp.lt.s32.totalorder %s4284_s28, %s4284_s28 }
  0x85   : > { %p3542_p10 = scmp.ne.s32.totalorder %s4284_s28, %s3541_s24  ;;  %p3550_p0 = scmp.lt.s32.totalorder %s3541_s24, %s3541_s24 }
  0x87   : > { %p3544_p11 = pnand %p3542_p10, %p4239_p7  ;;  %p3551_p2 = por %p3550_p0, %p3549_p13 }
  0x89   : > { %p3545_p12 = pneg %p3544_p11 }
  0x8b   : > { %p3552_p4 = pnand %p3551_p2, %p3545_p12 }
  0x8d   : > { %3555 = shalt.err (!%p3552_p4)
}
  0x8e   : > { %s5116_s25 = smov 64   ;;  %s4062_s23 = smov [#allocation18]  }
  0x8f   : > { %3234 = dma.hbm_to_vmem [thread:$0]  (!%p4225_p5), %s5054_s7, 512, %s4284_s28, [#allocation16], %s5116_s25, %s5116_s25, %s5087_s26  }
  0x90   : > { %s562_s17 = sshll.u32 %s4062_s23, 4  ;;  %s4063_s21 = smov [#allocation21]   ;;  %s563_s17 = int_to_ptr.vmem [resolvable:$true] %s562_s17 }
  0x91   : > { %s588_s29 = sshll.u32 %s4063_s21, 4  ;;  %s3556_s24 = scalar_lea.hbm %s5056_s9, 32  ;;  %s4333_s29 = int_to_ptr.vmem [resolvable:$true] %s588_s29 }
  0x92   : > { %p3557_p1 = scmp.ne.s32.totalorder %s5056_s9, %s3556_s24  ;;  %p3563_p8 = scmp.lt.u32.totalorder %s3556_s24, %s5056_s9 }
  0x94   : > { %p3559_p3 = pnand %p3557_p1, %p4239_p7 }
  0x96   : > { %p3560_p6 = pneg %p3559_p3 }
  0x98   : > { %p3565_p9 = pnand %p3563_p8, %p3560_p6 }
  0x9a   : > { %3568 = shalt.err (!%p3565_p9)
}
  0x9b   : > { %s3569_s1 = scalar_lea.vmem %s563_s17, 32  ;;  %p3577_p13 = scmp.lt.s32.totalorder %s563_s17, %s563_s17 }
  0x9c   : > { %p3570_p10 = scmp.ne.s32.totalorder %s563_s17, %s3569_s1  ;;  %p3578_p0 = scmp.lt.s32.totalorder %s3569_s1, %s3569_s1 }
  0x9e   : > { %p3572_p11 = pnand %p3570_p10, %p4239_p7  ;;  %p3579_p2 = por %p3578_p0, %p3577_p13 }
  0xa0   : > { %p3573_p12 = pneg %p3572_p11 }
  0xa2   : > { %p3580_p4 = pnand %p3579_p2, %p3573_p12 }
  0xa4   : > { %3583 = shalt.err (!%p3580_p4)
}
  0xa5   : > { %s5117_s16 = smov 1   ;;  %s5118_s19 = smov 16  }
  0xa6   : > { %3240 = dma.hbm_to_vmem [thread:$0]  (!%p4225_p5), %s5056_s9, 32, %s563_s17, [#allocation19], %s5118_s19, %s5118_s19, %s5117_s16  }
  0xa7   : > { %s3584_s24 = scalar_lea.hbm %s5058_s11, 512 }
  0xa8   : > { %p3585_p1 = scmp.ne.s32.totalorder %s5058_s11, %s3584_s24  ;;  %p3591_p8 = scmp.lt.u32.totalorder %s3584_s24, %s5058_s11 }
  0xaa   : > { %p3587_p3 = pnand %p3585_p1, %p4239_p7 }
  0xac   : > { %p3588_p6 = pneg %p3587_p3 }
  0xae   : > { %p3593_p9 = pnand %p3591_p8, %p3588_p6 }
  0xb0   : > { %3596 = shalt.err (!%p3593_p9)
}
  0xb1   : > { %s3597_s17 = scalar_lea.vmem %s4333_s29, 512  ;;  %p3605_p13 = scmp.lt.s32.totalorder %s4333_s29, %s4333_s29 }
  0xb2   : > { %p3598_p10 = scmp.ne.s32.totalorder %s4333_s29, %s3597_s17  ;;  %p3606_p0 = scmp.lt.s32.totalorder %s3597_s17, %s3597_s17 }
  0xb4   : > { %p3600_p11 = pnand %p3598_p10, %p4239_p7  ;;  %p3607_p2 = por %p3606_p0, %p3605_p13 }
  0xb6   : > { %p3601_p12 = pneg %p3600_p11 }
  0xb8   : > { %p3608_p4 = pnand %p3607_p2, %p3601_p12 }
  0xba   : > { %3611 = shalt.err (!%p3608_p4)
}
  0xbb   : > { %s5119_s26 = smov 4   ;;  %s4064_s18 = smov [#allocation24]  }
  0xbc   : > { %3246 = dma.hbm_to_vmem [thread:$0]  (!%p4225_p5), %s5058_s11, 512, %s4333_s29, [#allocation22], %s5116_s25, %s5116_s25, %s5119_s26  }
  0xbd   : > { %s614_s0 = sshll.u32 %s4064_s18, 4  ;;  %s4065_s24 = smov [#allocation27]   ;;  %s615_s0 = int_to_ptr.vmem [resolvable:$true] %s614_s0 }
  0xbe   : > { %s640_s27 = sshll.u32 %s4065_s24, 4  ;;  %s3612_s17 = scalar_lea.hbm %s5060_s13, 1024  ;;  %s4382_s27 = int_to_ptr.vmem [resolvable:$true] %s640_s27 }
  0xbf   : > { %p3613_p1 = scmp.ne.s32.totalorder %s5060_s13, %s3612_s17  ;;  %p3619_p8 = scmp.lt.u32.totalorder %s3612_s17, %s5060_s13 }
  0xc1   : > { %p3615_p3 = pnand %p3613_p1, %p4239_p7 }
  0xc3   : > { %p3616_p6 = pneg %p3615_p3 }
  0xc5   : > { %p3621_p9 = pnand %p3619_p8, %p3616_p6 }
  0xc7   : > { %3624 = shalt.err (!%p3621_p9)
}
  0xc8   : > { %s3625_s21 = scalar_lea.vmem %s615_s0, 1024  ;;  %p3633_p13 = scmp.lt.s32.totalorder %s615_s0, %s615_s0 }
  0xc9   : > { %p3626_p10 = scmp.ne.s32.totalorder %s615_s0, %s3625_s21  ;;  %p3634_p0 = scmp.lt.s32.totalorder %s3625_s21, %s3625_s21 }
  0xcb   : > { %p3628_p11 = pnand %p3626_p10, %p4239_p7  ;;  %p3635_p2 = por %p3634_p0, %p3633_p13 }
  0xcd   : > { %p3629_p12 = pneg %p3628_p11 }
  0xcf   : > { %p3636_p4 = pnand %p3635_p2, %p3629_p12 }
  0xd1   : > { %3639 = shalt.err (!%p3636_p4)
}
  0xd2   : > { %3252 = dma.hbm_to_vmem [thread:$0]  (!%p4225_p5), %s5060_s13, 1024, %s615_s0, [#allocation25], %s5116_s25, %s5116_s25, %s5119_s26  }
  0xd3   : > { %s3640_s28 = scalar_lea.hbm %s5062_s15, 32 }
  0xd4   : > { %p3641_p1 = scmp.ne.s32.totalorder %s5062_s15, %s3640_s28  ;;  %p3647_p8 = scmp.lt.u32.totalorder %s3640_s28, %s5062_s15 }
  0xd6   : > { %p3643_p3 = pnand %p3641_p1, %p4239_p7 }
  0xd8   : > { %p3644_p6 = pneg %p3643_p3 }
  0xda   : > { %p3649_p9 = pnand %p3647_p8, %p3644_p6 }
  0xdc   : > { %3652 = shalt.err (!%p3649_p9)
}
  0xdd   : > { %s3653_s0 = scalar_lea.vmem %s4382_s27, 32  ;;  %p3661_p13 = scmp.lt.s32.totalorder %s4382_s27, %s4382_s27 }
  0xde   : > { %p3654_p10 = scmp.ne.s32.totalorder %s4382_s27, %s3653_s0  ;;  %p3662_p0 = scmp.lt.s32.totalorder %s3653_s0, %s3653_s0 }
  0xe0   : > { %p3656_p11 = pnand %p3654_p10, %p4239_p7  ;;  %p3663_p2 = por %p3662_p0, %p3661_p13 }
  0xe2   : > { %p3657_p12 = pneg %p3656_p11 }
  0xe4   : > { %p3664_p4 = pnand %p3663_p2, %p3657_p12 }
  0xe6   : > { %3667 = shalt.err (!%p3664_p4)
}
  0xe7   : > { %3258 = dma.hbm_to_vmem [thread:$0]  (!%p4225_p5), %s5062_s15, 32, %s4382_s27, [#allocation28], %s5118_s19, %s5118_s19, %s5117_s16  }
  0xe8   : > { %s4066_s5 = smov [#allocation8]   ;;  %s4067_s24 = smov [#allocation11]  }
  0xe9   : > { %s471_s18 = sshll.u32 %s4066_s5, 4  ;;  %s497_s28 = sshll.u32 %s4067_s24, 4  ;;  %s472_s18 = int_to_ptr.vmem [resolvable:$true] %s471_s18  ;;  %s4431_s28 = int_to_ptr.vmem [resolvable:$true] %s497_s28 }
  0xea   : > { %s5120_s2 = sld [smem:[#allocation52_spill]] }
  0xf0   : > { %s3668_s23 = scalar_lea.hbm %s5120_s2, 2048 }
  0xf1   : > { %p3669_p1 = scmp.ne.s32.totalorder %s5120_s2, %s3668_s23  ;;  %p3675_p8 = scmp.lt.u32.totalorder %s3668_s23, %s5120_s2 }
  0xf3   : > { %p3671_p3 = pnand %p3669_p1, %p4239_p7 }
  0xf5   : > { %p3672_p6 = pneg %p3671_p3 }
  0xf7   : > { %p3677_p9 = pnand %p3675_p8, %p3672_p6 }
  0xf9   : > { %3680 = shalt.err (!%p3677_p9)
}
  0xfa   : > { %s3681_s3 = scalar_lea.vmem %s472_s18, 2048  ;;  %p3689_p13 = scmp.lt.s32.totalorder %s472_s18, %s472_s18 }
  0xfb   : > { %p3682_p10 = scmp.ne.s32.totalorder %s472_s18, %s3681_s3  ;;  %p3690_p0 = scmp.lt.s32.totalorder %s3681_s3, %s3681_s3 }
  0xfd   : > { %p3684_p11 = pnand %p3682_p10, %p4239_p7  ;;  %p3691_p2 = por %p3690_p0, %p3689_p13 }
  0xff   : > { %p3685_p12 = pneg %p3684_p11 }
 0x101   : > { %p3692_p4 = pnand %p3691_p2, %p3685_p12 }
 0x103   : > { %3695 = shalt.err (!%p3692_p4)
}
 0x104   : > { %3219 = dma.hbm_to_vmem [thread:$0]  (!%p4225_p5), %s5120_s2, 2048, %s472_s18, [#allocation7], %s5116_s25, %s5116_s25, %s5119_s26  }
 0x105   : > { %s5121_s4 = sld [smem:[#allocation54_spill]] }
 0x10b   : > { %s3696_s23 = scalar_lea.hbm %s5121_s4, 128 }
 0x10c   : > { %p3697_p1 = scmp.ne.s32.totalorder %s5121_s4, %s3696_s23  ;;  %p3703_p8 = scmp.lt.u32.totalorder %s3696_s23, %s5121_s4 }
 0x10e   : > { %p3699_p3 = pnand %p3697_p1, %p4239_p7 }
 0x110   : > { %p3700_p6 = pneg %p3699_p3 }
 0x112   : > { %p3705_p9 = pnand %p3703_p8, %p3700_p6 }
 0x114   : > { %3708 = shalt.err (!%p3705_p9)
}
 0x115   : > { %s3709_s25 = scalar_lea.vmem %s4431_s28, 128  ;;  %p3717_p13 = scmp.lt.s32.totalorder %s4431_s28, %s4431_s28 }
 0x116   : > { %p3710_p10 = scmp.ne.s32.totalorder %s4431_s28, %s3709_s25  ;;  %p3718_p0 = scmp.lt.s32.totalorder %s3709_s25, %s3709_s25 }
 0x118   : > { %p3712_p11 = pnand %p3710_p10, %p4239_p7  ;;  %p3719_p2 = por %p3718_p0, %p3717_p13 }
 0x11a   : > { %p3713_p12 = pneg %p3712_p11 }
 0x11c   : > { %p3720_p4 = pnand %p3719_p2, %p3713_p12 }
 0x11e   : > { %3723 = shalt.err (!%p3720_p4)
}
 0x11f   : > { %3225 = dma.hbm_to_vmem [thread:$0]  (!%p4225_p5), %s5121_s4, 128, %s4431_s28, [#allocation10], %s5118_s19, %s5118_s19, %s5117_s16  }
 0x120   : > { %s4068_s3 = smov [#allocation14]   ;;  %s4069_s24 = smov [#allocation17]  }
 0x121   : > { %s523_s5 = sshll.u32 %s4068_s3, 4  ;;  %s549_s1 = sshll.u32 %s4069_s24, 4  ;;  %s524_s5 = int_to_ptr.vmem [resolvable:$true] %s523_s5  ;;  %s4480_s1 = int_to_ptr.vmem [resolvable:$true] %s549_s1 }
 0x122   : > { %s5122_s6 = sld [smem:[#allocation56_spill]] }
 0x128   : > { %s3724_s29 = scalar_lea.hbm %s5122_s6, 128 }
 0x129   : > { %p3725_p1 = scmp.ne.s32.totalorder %s5122_s6, %s3724_s29  ;;  %p3731_p8 = scmp.lt.u32.totalorder %s3724_s29, %s5122_s6 }
 0x12b   : > { %p3727_p3 = pnand %p3725_p1, %p4239_p7 }
 0x12d   : > { %p3728_p6 = pneg %p3727_p3 }
 0x12f   : > { %p3733_p9 = pnand %p3731_p8, %p3728_p6 }
 0x131   : > { %3736 = shalt.err (!%p3733_p9)
}
 0x132   : > { %s3737_s25 = scalar_lea.vmem %s524_s5, 128  ;;  %p3745_p13 = scmp.lt.s32.totalorder %s524_s5, %s524_s5 }
 0x133   : > { %p3738_p10 = scmp.ne.s32.totalorder %s524_s5, %s3737_s25  ;;  %p3746_p0 = scmp.lt.s32.totalorder %s3737_s25, %s3737_s25 }
 0x135   : > { %p3740_p11 = pnand %p3738_p10, %p4239_p7  ;;  %p3747_p2 = por %p3746_p0, %p3745_p13 }
 0x137   : > { %p3741_p12 = pneg %p3740_p11 }
 0x139   : > { %p3748_p4 = pnand %p3747_p2, %p3741_p12 }
 0x13b   : > { %3751 = shalt.err (!%p3748_p4)
}
 0x13c   : > { %3231 = dma.hbm_to_vmem [thread:$0]  (!%p4225_p5), %s5122_s6, 128, %s524_s5, [#allocation13], %s5118_s19, %s5118_s19, %s5117_s16  }
 0x13d   : > { %s3752_s17 = scalar_lea.hbm %s5055_s8, 32 }
 0x13e   : > { %p3753_p1 = scmp.ne.s32.totalorder %s5055_s8, %s3752_s17  ;;  %p3759_p8 = scmp.lt.u32.totalorder %s3752_s17, %s5055_s8 }
 0x140   : > { %p3755_p3 = pnand %p3753_p1, %p4239_p7 }
 0x142   : > { %p3756_p6 = pneg %p3755_p3 }
 0x144   : > { %p3761_p9 = pnand %p3759_p8, %p3756_p6 }
 0x146   : > { %3764 = shalt.err (!%p3761_p9)
}
 0x147   : > { %s3765_s5 = scalar_lea.vmem %s4480_s1, 32  ;;  %p3773_p13 = scmp.lt.s32.totalorder %s4480_s1, %s4480_s1 }
 0x148   : > { %p3766_p10 = scmp.ne.s32.totalorder %s4480_s1, %s3765_s5  ;;  %p3774_p0 = scmp.lt.s32.totalorder %s3765_s5, %s3765_s5 }
 0x14a   : > { %p3768_p11 = pnand %p3766_p10, %p4239_p7  ;;  %p3775_p2 = por %p3774_p0, %p3773_p13 }
 0x14c   : > { %p3769_p12 = pneg %p3768_p11 }
 0x14e   : > { %p3776_p4 = pnand %p3775_p2, %p3769_p12 }
 0x150   : > { %3779 = shalt.err (!%p3776_p4)
}
 0x151   : > { %3237 = dma.hbm_to_vmem [thread:$0]  (!%p4225_p5), %s5055_s8, 32, %s4480_s1, [#allocation16], %s5118_s19, %s5118_s19, %s5117_s16  }
 0x152   : > { %s4070_s25 = smov [#allocation20]   ;;  %s4071_s18 = smov [#allocation23]  }
 0x153   : > { %s575_s26 = sshll.u32 %s4070_s25, 4  ;;  %s601_s3 = sshll.u32 %s4071_s18, 4  ;;  %s576_s26 = int_to_ptr.vmem [resolvable:$true] %s575_s26  ;;  %s4529_s3 = int_to_ptr.vmem [resolvable:$true] %s601_s3 }
 0x154   : > { %s3780_s23 = scalar_lea.hbm %s5057_s10, 32 }
 0x155   : > { %p3781_p1 = scmp.ne.s32.totalorder %s5057_s10, %s3780_s23  ;;  %p3787_p8 = scmp.lt.u32.totalorder %s3780_s23, %s5057_s10 }
 0x157   : > { %p3783_p3 = pnand %p3781_p1, %p4239_p7 }
 0x159   : > { %p3784_p6 = pneg %p3783_p3 }
 0x15b   : > { %p3789_p9 = pnand %p3787_p8, %p3784_p6 }
 0x15d   : > { %3792 = shalt.err (!%p3789_p9)
}
 0x15e   : > { %s3793_s5 = scalar_lea.vmem %s576_s26, 32  ;;  %p3801_p13 = scmp.lt.s32.totalorder %s576_s26, %s576_s26 }
 0x15f   : > { %p3794_p10 = scmp.ne.s32.totalorder %s576_s26, %s3793_s5  ;;  %p3802_p0 = scmp.lt.s32.totalorder %s3793_s5, %s3793_s5 }
 0x161   : > { %p3796_p11 = pnand %p3794_p10, %p4239_p7  ;;  %p3803_p2 = por %p3802_p0, %p3801_p13 }
 0x163   : > { %p3797_p12 = pneg %p3796_p11 }
 0x165   : > { %p3804_p4 = pnand %p3803_p2, %p3797_p12 }
 0x167   : > { %3807 = shalt.err (!%p3804_p4)
}
 0x168   : > { %3243 = dma.hbm_to_vmem [thread:$0]  (!%p4225_p5), %s5057_s10, 32, %s576_s26, [#allocation19], %s5118_s19, %s5118_s19, %s5117_s16  }
 0x169   : > { %s3808_s24 = scalar_lea.hbm %s5059_s12, 32 }
 0x16a   : > { %p3809_p1 = scmp.ne.s32.totalorder %s5059_s12, %s3808_s24  ;;  %p3815_p8 = scmp.lt.u32.totalorder %s3808_s24, %s5059_s12 }
 0x16c   : > { %p3811_p3 = pnand %p3809_p1, %p4239_p7 }
 0x16e   : > { %p3812_p6 = pneg %p3811_p3 }
 0x170   : > { %p3817_p9 = pnand %p3815_p8, %p3812_p6 }
 0x172   : > { %3820 = shalt.err (!%p3817_p9)
}
 0x173   : > { %s3821_s26 = scalar_lea.vmem %s4529_s3, 32  ;;  %p3829_p13 = scmp.lt.s32.totalorder %s4529_s3, %s4529_s3 }
 0x174   : > { %p3822_p10 = scmp.ne.s32.totalorder %s4529_s3, %s3821_s26  ;;  %p3830_p0 = scmp.lt.s32.totalorder %s3821_s26, %s3821_s26 }
 0x176   : > { %p3824_p11 = pnand %p3822_p10, %p4239_p7  ;;  %p3831_p2 = por %p3830_p0, %p3829_p13 }
 0x178   : > { %p3825_p12 = pneg %p3824_p11 }
 0x17a   : > { %p3832_p4 = pnand %p3831_p2, %p3825_p12 }
 0x17c   : > { %3835 = shalt.err (!%p3832_p4)
}
 0x17d   : > { %3249 = dma.hbm_to_vmem [thread:$0]  (!%p4225_p5), %s5059_s12, 32, %s4529_s3, [#allocation22], %s5118_s19, %s5118_s19, %s5117_s16  }
 0x17e   : > { %s4072_s5 = smov [#allocation26]   ;;  %s4073_s28 = smov [#allocation29]  }
 0x17f   : > { %s627_s27 = sshll.u32 %s4072_s5, 4  ;;  %s653_s25 = sshll.u32 %s4073_s28, 4  ;;  %s628_s27 = int_to_ptr.vmem [resolvable:$true] %s627_s27  ;;  %s4578_s25 = int_to_ptr.vmem [resolvable:$true] %s653_s25 }
 0x180   : > { %s3836_s17 = scalar_lea.hbm %s5061_s14, 32 }
 0x181   : > { %p3837_p1 = scmp.ne.s32.totalorder %s5061_s14, %s3836_s17  ;;  %p3843_p8 = scmp.lt.u32.totalorder %s3836_s17, %s5061_s14 }
 0x183   : > { %p3839_p3 = pnand %p3837_p1, %p4239_p7 }
 0x185   : > { %p3840_p6 = pneg %p3839_p3 }
 0x187   : > { %p3845_p9 = pnand %p3843_p8, %p3840_p6 }
 0x189   : > { %3848 = shalt.err (!%p3845_p9)
}
 0x18a   : > { %s3849_s26 = scalar_lea.vmem %s628_s27, 32  ;;  %p3857_p13 = scmp.lt.s32.totalorder %s628_s27, %s628_s27 }
 0x18b   : > { %p3850_p10 = scmp.ne.s32.totalorder %s628_s27, %s3849_s26  ;;  %p3858_p0 = scmp.lt.s32.totalorder %s3849_s26, %s3849_s26 }
 0x18d   : > { %p3852_p11 = pnand %p3850_p10, %p4239_p7  ;;  %p3859_p2 = por %p3858_p0, %p3857_p13 }
 0x18f   : > { %p3853_p12 = pneg %p3852_p11 }
 0x191   : > { %p3860_p4 = pnand %p3859_p2, %p3853_p12 }
 0x193   : > { %3863 = shalt.err (!%p3860_p4)
}
 0x194   : > { %3255 = dma.hbm_to_vmem [thread:$0]  (!%p4225_p5), %s5061_s14, 32, %s628_s27, [#allocation25], %s5118_s19, %s5118_s19, %s5117_s16  }
 0x195   : > { %s5123_s18 = sld [smem:[#allocation57_spill]] }
 0x19b   : > { %s3864_s24 = scalar_lea.hbm %s5123_s18, 32 }
 0x19c   : > { %p3865_p1 = scmp.ne.s32.totalorder %s5123_s18, %s3864_s24  ;;  %p3871_p8 = scmp.lt.u32.totalorder %s3864_s24, %s5123_s18 }
 0x19e   : > { %p3867_p3 = pnand %p3865_p1, %p4239_p7 }
 0x1a0   : > { %p3868_p6 = pneg %p3867_p3 }
 0x1a2   : > { %p3873_p9 = pnand %p3871_p8, %p3868_p6 }
 0x1a4   : > { %3876 = shalt.err (!%p3873_p9)
}
 0x1a5   : > { %s3877_s27 = scalar_lea.vmem %s4578_s25, 32  ;;  %p3885_p13 = scmp.lt.s32.totalorder %s4578_s25, %s4578_s25 }
 0x1a6   : > { %p3878_p10 = scmp.ne.s32.totalorder %s4578_s25, %s3877_s27  ;;  %p3886_p0 = scmp.lt.s32.totalorder %s3877_s27, %s3877_s27 }
 0x1a8   : > { %p3880_p11 = pnand %p3878_p10, %p4239_p7  ;;  %p3887_p2 = por %p3886_p0, %p3885_p13 }
 0x1aa   : > { %p3881_p12 = pneg %p3880_p11 }
 0x1ac   : > { %p3888_p4 = pnand %p3887_p2, %p3881_p12 }
 0x1ae   : > { %3891 = shalt.err (!%p3888_p4)
}
 0x1af   : > { %s5124_s21 = sld [smem:[#allocation46_spill]]  ;;  %s5125_s20 = sld [smem:[#allocation47_spill]] }
 0x1b0   : > { %s5126_s1 = sld [smem:[#allocation43_spill]]  ;;  %s5127_s5 = sld [smem:[#allocation42_spill]] }
 0x1b1   : > { %s5128_s28 = sld [smem:[#allocation41_spill]]  ;;  %s5129_s24 = sld [smem:[#allocation48_spill]] }
 0x1b2   : > { %3261 = dma.hbm_to_vmem [thread:$0]  (!%p4225_p5), %s5123_s18, 32, %s4578_s25, [#allocation28], %s5118_s19, %s5118_s19, %s5117_s16  }
 0x1b3   : > { %s2753_s22 = sadd.s32 4294967294, %s4052_s30   ;;  %p68_p3 = scmp.eq.s32.totalorder %s4052_s30, 0 }
 0x1b4   : > { %s5130_s0 = sadd.s32 4294967295, %s4052_s30   ;;  %p439_p13 = scmp.eq.s32.totalorder %s2753_s22, 3 }
 0x1b5   : > { %s50_s17 = sadd.s32 1, %s5124_s21  ;;  %s53_s23 = sadd.s32 1, %s5125_s20 }
 0x1b6   : > { %p51_p7 = scmp.ge.s32.totalorder %s50_s17, 2  ;;  %s60_s29 = sadd.s32 1, %s5126_s1 }
 0x1b7   : > { %p67_p1 = scmp.ne.s32.totalorder %s5126_s1, %s5127_s5  ;;  %p73_p6 = scmp.ne.s32.totalorder %s5127_s5, %s5128_s28 }
 0x1b8   : > { %s5159_s17 = smov (%p51_p7, %s50_s17), 0  ;;  %s5161_s23 = smov (!%p51_p7, %s53_s23), %s5125_s20 }
 0x1b9   : > { %p55_p8 = scmp.ge.s32.totalorder %s5161_s23, 2  ;;  %p433_p9 = scmp.eq.s32.totalorder %s5130_s0, 3 }
 0x1ba   : > { %p4641_p5 = por %p68_p3, %p67_p1  ;;  %p5132_p10 = scmp.ne.s32.totalorder %s5129_s24, 0 }
 0x1bb   : > { %s5163_s23 = smov (%p55_p8, %s5161_s23), 0  ;;  %p4653_p12 = por %p433_p9, %p67_p1 }
 0x1bc   : > { %p4647_p11 = por %p5132_p10, %p73_p6  ;;  %s57_s27 = ssub.s32 %s5125_s20, %s5163_s23 }
 0x1bd   : > { %s5134_s25 = scalar_select %p4653_p12, 1, 0 }
 0x1be   : > { %p3286_p0 = scmp.lt.s32.totalorder %s4052_s30, 4  ;;  %p58_p2 = scmp.eq.s32.totalorder %s57_s27, 0 }
 0x1bf   : > { %p4660_p4 = por %p439_p13, %p73_p6  ;;  %s667_s26 = sand.u32 1, %s5126_s1  }
 0x1c0   : > { %s2773_s21 = sshll.u32 %s5125_s20, 7  ;;  %s5165_s1 = smov (!%p58_p2, %s5126_s1), %s60_s29 }
 0x1c1   : > { %s5135_s3 = scalar_select %p4660_p4, 1, 0 }
 0x1c2   : > { %s2772_s5 = sshll.u32 %s667_s26, 3  ;;  %s5136_s0 = sld [smem:[#allocation50_spill]] }
 0x1c3   : > { %s671_s22 = scalar_lea.vmem [#allocation3], %s2772_s5  ;;  %p4676_p7 = pnand %p3286_p0, %p4641_p5 }
 0x1c4   : > { %s678_s27 = sshll.u32 %s671_s22, 4  ;;  %s668_s20 = scalar_lea.sflag [#allocation4], %s667_s26  ;;  %s4680_s27 = int_to_ptr.vmem [resolvable:$true] %s678_s27 }
 0x1c5   : > { %p3894_p3 = pneg %p4676_p7 }
 0x1c8   : > { %s5137_s2 = smov %s5136_s0  ;;  %s4672_s4 = scalar_lea.hbm %s5136_s0, %s2773_s21 }
 0x1c9   : > { %s3892_s29 = scalar_lea.hbm %s4672_s4, 128  ;;  %s3897_s16 = scalar_lea.hbm %s5137_s2, 256 }
 0x1ca   : > { %p3893_p1 = scmp.ne.s32.totalorder %s4672_s4, %s3892_s29  ;;  %p3898_p9 = scmp.lt.u32.totalorder %s4672_s4, %s5137_s2 }
 0x1cb   : > { %p3899_p5 = scmp.lt.u32.totalorder %s3897_s16, %s3892_s29  ;;  %p3901_p13 = scmp.lt.u32.totalorder %s3892_s29, %s4672_s4 }
 0x1cc   : > { %p3895_p6 = pnand %p3894_p3, %p3893_p1 }
 0x1cd   : > { %p3900_p10 = por %p3899_p5, %p3898_p9 }
 0x1ce   : > { %p3896_p8 = pneg %p3895_p6 }
 0x1cf   : > { %p3902_p0 = por %p3901_p13, %p3900_p10 }
 0x1d1   : > { %p3903_p2 = pnand %p3902_p0, %p3896_p8 }
 0x1d3   : > { %3906 = shalt.err (!%p3903_p2)
}
 0x1d4   : > { %s3907_s26 = scalar_lea.vmem %s4680_s27, 128  ;;  %s4074_s0 = smov [#allocation3]  }
 0x1d5   : > { %p3908_p1 = scmp.ne.s32.totalorder %s4680_s27, %s3907_s26  ;;  %s3912_s22 = sshll.u32 %s4074_s0, 4  ;;  %s3913_s22 = int_to_ptr.vmem [resolvable:$false] %s3912_s22 }
 0x1d6   : > { %s3914_s21 = scalar_lea.vmem %s3913_s22, 256  ;;  %p3915_p12 = scmp.lt.s32.totalorder %s4680_s27, %s3913_s22 }
 0x1d7   : > { %p3910_p6 = pnand %p3908_p1, %p3894_p3  ;;  %p3916_p9 = scmp.lt.s32.totalorder %s3914_s21, %s3907_s26 }
 0x1d9   : > { %p3911_p4 = pneg %p3910_p6  ;;  %p3917_p5 = por %p3916_p9, %p3915_p12 }
 0x1db   : > { %p3918_p10 = pnand %p3917_p5, %p3911_p4 }
 0x1dd   : > { %3921 = shalt.err (!%p3918_p10)
}
 0x1de   : > { %3265 = dma.hbm_to_vmem [thread:$0]  (!%p4676_p7), %s4672_s4, 128, %s4680_s27, %s668_s20  }
 0x1df   : > { %s5139_s29 = sld [smem:[#allocation49_spill]] }
 0x1e5   : > { %p5140_p8 = scmp.ne.s32.totalorder %s5139_s29, 0 }
 0x1e6   : > { %s5141_s5 = sld [smem:[#allocation42_spill]] (!%p5140_p8) }
 0x1e7   : > { %687 = sbr.rel (%p5140_p8) target bundleno = 4952 (0x1358), region = 88 }
 0x1ec   : > { %s4710_s16 = sand.u32 (!%p5140_p8), 1, %s5141_s5  }
 0x1ed   : > { %s2775_s28 = sshll.u32 (!%p5140_p8), %s4710_s16, 3  ;;  %s690_s24 = scalar_lea.sflag (!%p5140_p8), [#allocation4], %s4710_s16 }
 0x1ee   : > { %s693_s26 = scalar_lea.vmem [#allocation3], %s2775_s28 }
 0x1ef   : > { %3983 = dma.done.wait (%p4647_p11), %s690_s24, 128  }
 0x1f0   : > { %3985 = vsyncadd (%p4647_p11), %s690_s24, 4294967168  ;;  %s5142_s6 = sld [smem:[#allocation48_spill]] }
 0x1f6   : > { %p5143_p12 = scmp.ne.s32.totalorder %s5142_s6, 0 }
 0x1f8   : > { %3987 = dma.done.wait (%p5143_p12), [#allocation7], 4096  }
 0x1f9   : > { %3989 = vsyncadd (%p5143_p12), [#allocation7], 4294963200 }
 0x1fa   : > { %3991 = dma.done.wait (%p5143_p12), [#allocation10], 2176  }
 0x1fb   : > { %3993 = vsyncadd (%p5143_p12), [#allocation10], 4294965120 }
 0x1fc   : > { %3995 = dma.done.wait (%p5143_p12), [#allocation13], 256  }
 0x1fd   : > { %3997 = vsyncadd (%p5143_p12), [#allocation13], 4294967040 }
 0x1fe   : > { %3999 = dma.done.wait (%p5143_p12), [#allocation16], 544  }
 0x1ff   : > { %4001 = vsyncadd (%p5143_p12), [#allocation16], 4294966752 }
 0x200   : > { %4003 = dma.done.wait (%p5143_p12), [#allocation19], 64  }
 0x201   : > { %4005 = vsyncadd (%p5143_p12), [#allocation19], 4294967232 }
 0x202   : > { %4007 = dma.done.wait (%p5143_p12), [#allocation22], 544  }
 0x203   : > { %4009 = vsyncadd (%p5143_p12), [#allocation22], 4294966752 }
 0x204   : > { %4011 = dma.done.wait (%p5143_p12), [#allocation25], 1056  }
 0x205   : > { %4013 = vsyncadd (%p5143_p12), [#allocation25], 4294966240 }
 0x206   : > { %4015 = dma.done.wait (%p5143_p12), [#allocation28], 64  }
 0x207   : > { %4017 = vsyncadd (%p5143_p12), [#allocation28], 4294967232  ;;  %s4750_s4 = scalar_lea.vmem [#allocation30], %s2775_s28  ;;  %s5144_s19 = sld [smem:[#allocation44_spill]] }
 0x20d   : > { %p2793_p11 = scmp.ne.s32.totalorder %s5144_s19, 0 }
 0x20e   : > { %v813_v0 = vld [vmem:[%s693_s26] sm:$0xff] (!%p2793_p11)  ;;  %vm814_vm0 = vcmask (!%p2793_p11), 261120  }
 0x20f   : > { %812 = sbr.rel (%p2793_p11) target bundleno = 534 (0x216), region = 160  ;;  %815 = vst.msk [vmem:[#allocation2] sm:$0xff] (!%p2793_p11), %vm814_vm0, %v813_v0 }
 0x216 PF: > { %s5145_s27 = sld [smem:[#allocation44_spill]]  ;;  %v4075_v1 = vmov 0.0   ;;  %vm4076_vm1 = vmmov 0   ;;  %v4761_v3 = vld [vmem:[#allocation2] sm:$0xff]  ;;  %vm927_vm2 = vcmask 261120   ;;  %vm1090_vm3 = vcmask 64512  }
 0x217   : > { %2965 = vmatprep.subr.bf16.mxu1 %v4075_v1  ;;  %2957 = vmatprep.subr.bf16.mxu0 %v4075_v1  ;;  %v4775_v7 = vpack.c.bf16 %v4761_v3, %v4761_v3  ;;  %vm1150_vm4 = vcmask 1043456   ;;  %vm2402_vm6 = vcmask 523264  }
 0x218   : > { %2969 = vmatprep.mubr.msk.bf16.mxu1 %vm4076_vm1, %v4075_v1  ;;  %2961 = vmatprep.mubr.msk.bf16.mxu0 %vm4076_vm1, %v4075_v1 }
 0x21c   : > { %s2883_s20 = sshll.u32 %s5145_s27, 6  ;;  %s2798_s29 = sshll.u32 %s5145_s27, 2 }
 0x21d   : > { %s4756_s0 = scalar_lea.vmem [#allocation8], %s2883_s20  ;;  %s4766_s22 = scalar_lea.vmem [#allocation6], %s2883_s20 }
 0x21e   : > { %v3390_v2 = vld [vmem:[%s4756_s0] sm:$0xff]   ;;  %v3391_v4 = vld [vmem:[%s4756_s0 + $0x8] sm:$0xff]   ;;  %s4771_s21 = scalar_lea.vmem [#allocation9], %s2883_s20  ;;  %s4797_s5 = scalar_lea.vmem [#allocation12], %s2798_s29  ;;  %v3398_v38 = vld [vmem:[%s4766_s22 + $0x10] sm:$0xff]  }
 0x21f   : > { %2966 = vmatpush3.bf16.msra.mxu1 %v3390_v2  ;;  %v3392_v5 = vld [vmem:[%s4766_s22] sm:$0xff]   ;;  %v3393_v6 = vld [vmem:[%s4766_s22 + $0x8] sm:$0xff]   ;;  %s4800_s28 = scalar_lea.vmem [#allocation11], %s2798_s29  ;;  %s4809_s24 = scalar_lea.vmem [#allocation14], %s2798_s29  ;;  %v3399_v39 = vld [vmem:[%s4766_s22 + $0x18] sm:$0xff]  }
 0x220   : > { %2967 = vmatprep.subr.bf16.mxu1 %v4075_v1  ;;  %2958 = vmatpush3.bf16.msra.mxu0 %v3392_v5  ;;  %v3394_v8 = vld [vmem:[%s4771_s21] sm:$0xff]   ;;  %v3395_v9 = vld [vmem:[%s4771_s21 + $0x8] sm:$0xff]   ;;  %v3396_v44 = vld [vmem:[%s4756_s0 + $0x10] sm:$0xff]   ;;  %s2886_s26 = sshll.u32 %s5145_s27, 4  ;;  %s895_s20 = scalar_lea.vmem [#allocation17], %s5145_s27 }
 0x221   : > { %2959 = vmatprep.subr.bf16.mxu0 %v4075_v1  ;;  %v2804_v10 = vld [vmem:[%s4797_s5] ss:$0 sm:$0xff]  ;;  %v3397_v47 = vld [vmem:[%s4756_s0 + $0x18] sm:$0xff]   ;;  %v3400_v52 = vld [vmem:[%s4771_s21 + $0x10] sm:$0xff]   ;;  %s4854_s6 = scalar_lea.vmem [#allocation21], %s2886_s26  ;;  %s4856_s19 = scalar_lea.vmem [#allocation15], %s2886_s26 }
 0x222   : > { %v2800_v15 = vld [vmem:[%s4800_s28] ss:$0 sm:$0xff]  ;;  %v3401_v53 = vld [vmem:[%s4771_s21 + $0x18] sm:$0xff]   ;;  %v2818_v58 = vld [vmem:[%s4797_s5 + $0x1] ss:$0 sm:$0xff]  ;;  %s903_s26 = scalar_lea.vmem [#allocation29], %s5145_s27 }
 0x223   : > { %2968 = vmatpush3.bf16.msra.mxu1 %v3391_v4  ;;  %v2808_v31 = vld [vmem:[%s4809_s24] ss:$0 sm:$0xff]  ;;  %v2814_v63 = vld [vmem:[%s4800_s28 + $0x1] ss:$0 sm:$0xff]  ;;  %p2878_p4 = scmp.ne.s32.totalorder %s5145_s27, 1 }
 0x224   : > { %2981 = vmatprep.subr.bf16.mxu1 %v4075_v1  ;;  %2960 = vmatpush3.bf16.msra.mxu0 %v3393_v6 }
 0x225   : > { %2973 = vmatprep.subr.bf16.mxu0 %v4075_v1 }
 0x226   : > { %2970 = vmatmul.mubr.msk.bf16.vlgmr.msra.gmra.mrb[0].mxu1 %vm927_vm2, %v4775_v7 }
 0x227   : > { %2983 = vmatprep.mubr.msk.bf16.mxu1 %vm4076_vm1, %v4075_v1  ;;  %2962 = vmatmul.mubr.msk.bf16.vlgmr.msra.gmra.mrb[0].mxu0 %vm927_vm2, %v4775_v7 }
 0x228   : > { %2977 = vmatprep.mubr.msk.bf16.mxu0 %vm4076_vm1, %v4075_v1  ;;  %2974 = vmatpush3.bf16.msra.mxu0 %v3394_v8 }
 0x229   : > { %2975 = vmatprep.subr.bf16.mxu0 %v4075_v1 }
 0x22c   : > { %2976 = vmatpush3.bf16.msra.mxu0 %v3395_v9 }
 0x22d   : > { %2987 = vmatprep.subr.bf16.mxu0 %v4075_v1 }
 0x22f   : > { %2978 = vmatmul.mubr.msk.bf16.vlgmr.msra.gmra.mrb[4].mxu0 %vm927_vm2, %v4775_v7 }
 0x230   : > { %2989 = vmatprep.mubr.msk.bf16.mxu0 %vm4076_vm1, %v4075_v1 }
 0x2f9   : > { %v1023_v11 = vpop.f32.mrb[0].mxu1 }
 0x2fa   : > { %v1024_v12 = vadd.f32 %v2804_v10, %v1023_v11  ;;  %v2971_v13 = vpop.f32.mrb[1].mxu1  ;;  %v965_v16 = vpop.f32.mrb[0].mxu0 }
 0x2fb   : > { %v1026_v14 = vpop.f32.mrb[2].mxu1  ;;  %v2963_v19 = vpop.f32.mrb[1].mxu0  ;;  %v966_v22 = vadd.f32 %v2800_v15, %v965_v16  ;;  %v2822_v13 = vld [vmem:[%s4809_s24 + $0x1] ss:$0 sm:$0xff] }
 0x2fc   : > { %v1088_v17 = vpack.c.bf16 %v1024_v12, %v1024_v12  ;;  %v2972_v18 = vpop.f32.mrb[3].mxu1  ;;  %v968_v20 = vpop.f32.mrb[2].mxu0 }
 0x2fd   : > { %v2964_v23 = vpop.f32.mrb[3].mxu0  ;;  %v1087_v24 = vpack.c.bf16 %v966_v22, %v966_v22 }
 0x2fe   : > { %v1095_v21 = vsel %vm1090_vm3, %v1088_v17, 0 }
 0x2ff   : > { %2982 = vmatpush3.bf16.xpose.msra.mxu1 %v1095_v21 }
 0x300   : > { %2993 = vmatprep.subr.bf16.mxu1 %v4075_v1 }
 0x302   : > { %v1081_v30 = vpop.f32.mrb[4].mxu0 }
 0x303   : > { %v2979_v32 = vpop.f32.mrb[5].mxu0  ;;  %v1082_v33 = vadd.f32 %v2808_v31, %v1081_v30 }
 0x304   : > { %v1084_v34 = vpop.f32.mrb[6].mxu0 }
 0x305   : > { %v2980_v35 = vpop.f32.mrb[7].mxu0  ;;  %v1089_v36 = vpack.c.bf16 %v1082_v33, %v1082_v33  ;;  %v3402_v33 = vld [vmem:[%s4756_s0 + $0x20] sm:$0xff]  }
 0x306   : > { %2984 = vmatmul.mubr.msk.bf16.vlgmr.msra.gmra.mrb[4].mxu1 %vm1090_vm3, %v1087_v24  ;;  %v892_v34 = vld [vmem:[%s4856_s19 + $0x4] sm:$0xf] }
 0x307   : > { %2997 = vmatprep.mubr.msk.bf16.mxu1 %vm4076_vm1, %v4075_v1  ;;  %v1152_v37 = vsel %vm1150_vm4, %v1089_v36, 0  ;;  %2994 = vmatpush3.bf16.msra.mxu1 %v3398_v38  ;;  %v1483_v35 = vsel %vm1150_vm4, %v892_v34, 0  ;;  %v3403_v36 = vld [vmem:[%s4756_s0 + $0x28] sm:$0xff]   ;;  %v3411_v34 = vld [vmem:[%s4766_s22 + $0x38] sm:$0xff]  }
 0x308   : > { %2988 = vmatpush3.bf16.msra.mxu0 %v1152_v37  ;;  %2995 = vmatprep.subr.bf16.mxu1 %v4075_v1 }
 0x309   : > { %3001 = vmatprep.subr.bf16.mxu0 %v4075_v1 }
 0x30b   : > { %2996 = vmatpush3.bf16.msra.mxu1 %v3399_v39 }
 0x30c   : > { %3009 = vmatprep.subr.bf16.mxu1 %v4075_v1 }
 0x30e   : > { %2998 = vmatmul.mubr.msk.bf16.vlgmr.msra.gmra.mrb[8].mxu1 %vm927_vm2, %v4775_v7 }
 0x30f   : > { %3013 = vmatprep.mubr.msk.bf16.mxu1 %vm4076_vm1, %v4075_v1  ;;  %3010 = vmatpush3.bf16.msra.mxu1 %v3400_v52 }
 0x310   : > { %3011 = vmatprep.subr.bf16.mxu1 %v4075_v1 }
 0x313   : > { %3012 = vmatpush3.bf16.msra.mxu1 %v3401_v53 }
 0x314   : > { %3023 = vmatprep.subr.bf16.mxu1 %v4075_v1 }
 0x316   : > { %3014 = vmatmul.mubr.msk.bf16.vlgmr.msra.gmra.mrb[12].mxu1 %vm927_vm2, %v4775_v7 }
 0x317   : > { %3025 = vmatprep.mubr.msk.bf16.mxu1 %vm4076_vm1, %v4075_v1 }
 0x3d9   : > { %v1131_v25 = vpop.f32.mrb[4].mxu1 }
 0x3da   : > { %v2985_v26 = vpop.f32.mrb[5].mxu1  ;;  %v1137_v27 = vsel %vm1090_vm3, %v1131_v25, -inf }
 0x3db   : > { %1138 = vmax.xlane.f32.xlu0 %v1137_v27  ;;  %v1134_v28 = vpop.f32.mrb[6].mxu1 }
 0x3dc   : > { %v2986_v29 = vpop.f32.mrb[7].mxu1 }
 0x3e1   : > { %v1249_v48 = vpop.f32.mrb[8].mxu1 }
 0x3e2   : > { %v2999_v49 = vpop.f32.mrb[9].mxu1  ;;  %v1250_v5 = vadd.f32 %v2814_v63, %v1249_v48 }
 0x3e3   : > { %v1252_v50 = vpop.f32.mrb[10].mxu1 }
 0x3e4   : > { %v3000_v51 = vpop.f32.mrb[11].mxu1  ;;  %v1371_v6 = vpack.c.bf16 %v1250_v5, %v1250_v5 }
 0x3e5   : > { %v2834_v51 = vld [vmem:[%s4797_s5 + $0x2] ss:$0 sm:$0xff] }
 0x3e9   : > { %v1365_v14 = vpop.f32.mrb[12].mxu1 }
 0x3ea   : > { %v1366_v15 = vadd.f32 %v2822_v13, %v1365_v14  ;;  %v3015_v16 = vpop.f32.mrb[13].mxu1 }
 0x3eb   : > { %v1368_v17 = vpop.f32.mrb[14].mxu1 }
 0x3ec   : > { %v1373_v18 = vpack.c.bf16 %v1366_v15, %v1366_v15  ;;  %v3016_v19 = vpop.f32.mrb[15].mxu1  ;;  %v2838_v17 = vld [vmem:[%s4809_s24 + $0x2] ss:$0 sm:$0xff] }
 0x3ee   : > { %v1434_v20 = vsel %vm1150_vm4, %v1373_v18, 0 }
 0x3ef   : > { %3024 = vmatpush3.bf16.msra.mxu1 %v1434_v20 }
 0x3f0   : > { %3035 = vmatprep.subr.bf16.mxu1 %v4075_v1 }
 0x468   : > { %v1139_v40 = vpop.xlane.xlu0 %1138 }
 0x469   : > { %v1140_v41 = vsub.f32 %v1131_v25, %v1139_v40  ;;  %v891_v25 = vld [vmem:[%s4856_s19] sm:$0xf] }
 0x46a   : > { %v1529_v29 = vsel %vm1150_vm4, %v891_v25, 0 }
 0x46b   : > { %v1141_v42 = vmul.f32 1.442695, %v1140_v41 }
 0x46d   : > { %3420 = vpow2.f32 %v1141_v42 }
 0x477   : > { %v3421_v43 = vpop.eup %3420 }
 0x478   : > { %v1143_v45 = vsel %vm1090_vm3, %v3421_v43, 0.0  ;;  %v1146_v46 = vpack.c.bf16 %v3421_v43, %v3421_v43  ;;  %v3404_v43 = vld [vmem:[%s4766_s22 + $0x20] sm:$0xff]  }
 0x479   : > { %1144 = vadd.xlane.f32.xlu1 %v1143_v45 }
 0x47a   : > { %2990 = vmatmul.mubr.msk.bf16.vlgmr.msra.gmra.mrb[8].mxu0 %vm1090_vm3, %v1146_v46  ;;  %v3405_v46 = vld [vmem:[%s4766_s22 + $0x28] sm:$0xff]  }
 0x47b   : > { %3002 = vmatpush3.bf16.msra.mxu0 %v3396_v44  ;;  %3005 = vmatprep.mubr.msk.bf16.mxu0 %vm4076_vm1, %v4075_v1 }
 0x47c   : > { %3003 = vmatprep.subr.bf16.mxu0 %v4075_v1 }
 0x47f   : > { %3004 = vmatpush3.bf16.msra.mxu0 %v3397_v47 }
 0x480   : > { %3017 = vmatprep.subr.bf16.mxu0 %v4075_v1 }
 0x482   : > { %3006 = vmatmul.mubr.msk.bf16.vlgmr.msra.gmra.mrb[12].mxu0 %vm927_vm2, %v4775_v7 }
 0x483   : > { %3019 = vmatprep.mubr.msk.bf16.mxu0 %vm4076_vm1, %v4075_v1 }
 0x506   : > { %v1145_v24 = vpop.xlane.xlu1 %1144 }
 0x54d   : > { %v1188_v54 = vpop.f32.mrb[8].mxu0 }
 0x54e   : > { %v2991_v55 = vpop.f32.mrb[9].mxu0 }
 0x54f   : > { %v1191_v56 = vpop.f32.mrb[10].mxu0 }
 0x550   : > { %v2992_v57 = vpop.f32.mrb[11].mxu0 }
 0x555   : > { %v1307_v59 = vpop.f32.mrb[12].mxu0 }
 0x556   : > { %v1308_v60 = vadd.f32 %v2818_v58, %v1307_v59  ;;  %v3007_v61 = vpop.f32.mrb[13].mxu0  ;;  %v3406_v59 = vld [vmem:[%s4771_s21 + $0x20] sm:$0xff]  }
 0x557   : > { %v1310_v62 = vpop.f32.mrb[14].mxu0 }
 0x558   : > { %v1372_v0 = vpack.c.bf16 %v1308_v60, %v1308_v60  ;;  %v3008_v2 = vpop.f32.mrb[15].mxu0  ;;  %v3407_v60 = vld [vmem:[%s4771_s21 + $0x28] sm:$0xff]  }
 0x55a   : > { %v1378_v4 = vsel %vm1090_vm3, %v1372_v0, 0 }
 0x55b   : > { %3018 = vmatpush3.bf16.xpose.msra.mxu0 %v1378_v4  ;;  %v2830_v4 = vld [vmem:[%s4800_s28 + $0x2] ss:$0 sm:$0xff] }
 0x55c   : > { %3029 = vmatprep.subr.bf16.mxu0 %v4075_v1 }
 0x562   : > { %3020 = vmatmul.mubr.msk.bf16.vlgmr.msra.gmra.mrb[16].mxu0 %vm1090_vm3, %v1371_v6 }
 0x563   : > { %3031 = vmatprep.mubr.msk.bf16.mxu0 %vm4076_vm1, %v4075_v1  ;;  %3030 = vmatpush3.bf16.msra.mxu0 %v1483_v35 }
 0x564   : > { %3041 = vmatprep.subr.bf16.mxu0 %v4075_v1 }
 0x635   : > { %v1414_v8 = vpop.f32.mrb[16].mxu0 }
 0x636   : > { %v3021_v9 = vpop.f32.mrb[17].mxu0  ;;  %v1420_v10 = vsel %vm1090_vm3, %v1414_v8, -inf }
 0x637   : > { %1421 = vmax.xlane.f32.xlu0 %v1420_v10  ;;  %v1417_v11 = vpop.f32.mrb[18].mxu0 }
 0x638   : > { %v3022_v12 = vpop.f32.mrb[19].mxu0 }
 0x6c4   : > { %v1422_v21 = vpop.xlane.xlu0 %1421 }
 0x6c5   : > { %v1423_v22 = vsub.f32 %v1414_v8, %v1422_v21 }
 0x6c7   : > { %v1424_v23 = vmul.f32 1.442695, %v1423_v22 }
 0x6c9   : > { %3422 = vpow2.f32 %v1424_v23 }
 0x6ca   : > { %3424 = vrcp.f32 %v1145_v24 }
 0x6d3   : > { %v3423_v26 = vpop.eup %3422 }
 0x6d4   : > { %v1426_v27 = vsel %vm1090_vm3, %v3423_v26, 0.0  ;;  %v1429_v28 = vpack.c.bf16 %v3423_v26, %v3423_v26  ;;  %v3425_v30 = vpop.eup %3424 }
 0x6d5   : > { %1427 = vadd.xlane.f32.xlu1 %v1426_v27  ;;  %v1195_v31 = vmul.f32 %v3425_v30, %v1188_v54 }
 0x6d6   : > { %3026 = vmatmul.mubr.msk.bf16.vlgmr.msra.gmra.mrb[16].mxu1 %vm1090_vm3, %v1429_v28 }
 0x6d7   : > { %3036 = vmatpush3.bf16.msra.mxu1 %v1529_v29  ;;  %3037 = vmatprep.mubr.msk.bf16.mxu1 %vm4076_vm1, %v4075_v1  ;;  %v1196_v32 = vpack.c.bf16 %v1195_v31, %v1195_v31  ;;  %v893_v31 = vld [vmem:[%s4856_s19 + $0x8] sm:$0xf] }
 0x6d8   : > { %3049 = vmatprep.subr.bf16.mxu1 %v4075_v1 }
 0x6de   : > { %3038 = vmatmul.mubr.msk.bf16.vlgmr.msra.gmra.mrb[20].mxu1 %vm1090_vm3, %v1196_v32  ;;  %v1857_v32 = vsel %vm1150_vm4, %v893_v31, 0 }
 0x6df   : > { %3053 = vmatprep.mubr.msk.bf16.mxu1 %vm4076_vm1, %v4075_v1  ;;  %3050 = vmatpush3.bf16.msra.mxu1 %v3402_v33  ;;  %v3410_v33 = vld [vmem:[%s4766_s22 + $0x30] sm:$0xff]   ;;  %s899_s22 = scalar_lea.vmem [#allocation20], %s5145_s27 }
 0x6e0   : > { %3051 = vmatprep.subr.bf16.mxu1 %v4075_v1 }
 0x6e3   : > { %3052 = vmatpush3.bf16.msra.mxu1 %v3403_v36 }
 0x6e4   : > { %3065 = vmatprep.subr.bf16.mxu1 %v4075_v1 }
 0x6e6   : > { %3054 = vmatmul.mubr.msk.bf16.vlgmr.msra.gmra.mrb[24].mxu1 %vm927_vm2, %v4775_v7 }
 0x6e7   : > { %3067 = vmatprep.mubr.msk.bf16.mxu1 %vm4076_vm1, %v4075_v1 }
 0x762   : > { %v1428_v37 = vpop.xlane.xlu1 %1427 }
 0x763   : > { %3426 = vrcp.f32 %v1428_v37 }
 0x76d   : > { %v3427_v38 = vpop.eup %3426 }
 0x7a9   : > { %v1470_v39 = vpop.f32.mrb[16].mxu1 }
 0x7aa   : > { %v1477_v40 = vmul.f32 %v3427_v38, %v1470_v39  ;;  %v3027_v41 = vpop.f32.mrb[17].mxu1 }
 0x7ab   : > { %v1473_v42 = vpop.f32.mrb[18].mxu1  ;;  %v3408_v41 = vld [vmem:[%s4756_s0 + $0x30] sm:$0xff]  }
 0x7ac   : > { %v1478_v44 = vpack.c.bf16 %v1477_v40, %v1477_v40  ;;  %v3028_v45 = vpop.f32.mrb[19].mxu1 }
 0x7ae   : > { %3032 = vmatmul.mubr.msk.bf16.vlgmr.msra.gmra.mrb[20].mxu0 %vm1090_vm3, %v1478_v44  ;;  %v3409_v44 = vld [vmem:[%s4756_s0 + $0x38] sm:$0xff]   ;;  %s897_s0 = scalar_lea.vmem [#allocation18], %s5145_s27 }
 0x7af   : > { %3042 = vmatpush3.bf16.msra.mxu0 %v3404_v43  ;;  %3045 = vmatprep.mubr.msk.bf16.mxu0 %vm4076_vm1, %v4075_v1 }
 0x7b0   : > { %3043 = vmatprep.subr.bf16.mxu0 %v4075_v1 }
 0x7b1   : > { %v1565_v47 = vpop.f32.mrb[20].mxu1 }
 0x7b2   : > { %v3039_v48 = vpop.f32.mrb[21].mxu1 }
 0x7b3   : > { %v1568_v49 = vpop.f32.mrb[22].mxu1  ;;  %3044 = vmatpush3.bf16.msra.mxu0 %v3405_v46 }
 0x7b4   : > { %v3040_v50 = vpop.f32.mrb[23].mxu1  ;;  %3057 = vmatprep.subr.bf16.mxu0 %v4075_v1  ;;  %v3412_v49 = vld [vmem:[%s4771_s21 + $0x30] sm:$0xff]  }
 0x7b5   : > { %v3413_v50 = vld [vmem:[%s4771_s21 + $0x38] sm:$0xff]   ;;  %s2888_s21 = sshll.u32 %s5145_s27, 5 }
 0x7b6   : > { %3046 = vmatmul.mubr.msk.bf16.vlgmr.msra.gmra.mrb[24].mxu0 %vm927_vm2, %v4775_v7  ;;  %s2274_s29 = scalar_lea.vmem [#allocation24], %s2888_s21 }
 0x7b7   : > { %3061 = vmatprep.mubr.msk.bf16.mxu0 %vm4076_vm1, %v4075_v1  ;;  %3058 = vmatpush3.bf16.msra.mxu0 %v3406_v59 }
 0x7b8   : > { %3059 = vmatprep.subr.bf16.mxu0 %v4075_v1 }
 0x7b9   : > { %v1681_v52 = vpop.f32.mrb[24].mxu1 }
 0x7ba   : > { %v1682_v53 = vadd.f32 %v2834_v51, %v1681_v52  ;;  %v3055_v54 = vpop.f32.mrb[25].mxu1 }
 0x7bb   : > { %v1684_v55 = vpop.f32.mrb[26].mxu1  ;;  %3060 = vmatpush3.bf16.msra.mxu0 %v3407_v60 }
 0x7bc   : > { %v1746_v56 = vpack.c.bf16 %v1682_v53, %v1682_v53  ;;  %v3056_v57 = vpop.f32.mrb[27].mxu1  ;;  %3071 = vmatprep.subr.bf16.mxu0 %v4075_v1 }
 0x7be   : > { %v1752_v58 = vsel %vm1090_vm3, %v1746_v56, 0  ;;  %3062 = vmatmul.mubr.msk.bf16.vlgmr.msra.gmra.mrb[28].mxu0 %vm927_vm2, %v4775_v7  ;;  %v2849_v56 = vld [vmem:[%s4797_s5 + $0x3] ss:$0 sm:$0xff]  ;;  %s905_s5 = scalar_lea.vmem [#allocation23], %s5145_s27 }
 0x7bf   : > { %3066 = vmatpush3.bf16.xpose.msra.mxu1 %v1752_v58  ;;  %3073 = vmatprep.mubr.msk.bf16.mxu0 %vm4076_vm1, %v4075_v1 }
 0x7c0   : > { %3077 = vmatprep.subr.bf16.mxu1 %v4075_v1 }
 0x881   : > { %v1519_v61 = vpop.f32.mrb[20].mxu0 }
 0x882   : > { %v4901_v62 = vadd.f32 %v1565_v47, %v1519_v61  ;;  %v3033_v63 = vpop.f32.mrb[21].mxu0  ;;  %v2845_v61 = vld [vmem:[%s4800_s28 + $0x3] ss:$0 sm:$0xff]  ;;  %s907_s28 = scalar_lea.vmem [#allocation26], %s5145_s27 }
 0x883   : > { %v1522_v0 = vpop.f32.mrb[22].mxu0 }
 0x884   : > { %v3034_v2 = vpop.f32.mrb[23].mxu0 }
 0x889   : > { %v1623_v5 = vpop.f32.mrb[24].mxu0 }
 0x88a   : > { %v1624_v6 = vadd.f32 %v2830_v4, %v1623_v5  ;;  %v3047_v8 = vpop.f32.mrb[25].mxu0 }
 0x88b   : > { %v1626_v9 = vpop.f32.mrb[26].mxu0 }
 0x88c   : > { %v1745_v10 = vpack.c.bf16 %v1624_v6, %v1624_v6  ;;  %v3048_v11 = vpop.f32.mrb[27].mxu0 }
 0x88e   : > { %3068 = vmatmul.mubr.msk.bf16.vlgmr.msra.gmra.mrb[28].mxu1 %vm1090_vm3, %v1745_v10  ;;  %v2853_v10 = vld [vmem:[%s4809_s24 + $0x3] ss:$0 sm:$0xff]  ;;  %s901_s24 = scalar_lea.vmem [#allocation27], %s5145_s27 }
 0x88f   : > { %3079 = vmatprep.mubr.msk.bf16.mxu1 %vm4076_vm1, %v4075_v1  ;;  %3078 = vmatpush3.bf16.msra.mxu1 %v1857_v32 }
 0x890   : > { %3091 = vmatprep.subr.bf16.mxu1 %v4075_v1 }
 0x891   : > { %v1739_v18 = vpop.f32.mrb[28].mxu0 }
 0x892   : > { %v1740_v19 = vadd.f32 %v2838_v17, %v1739_v18  ;;  %v3063_v20 = vpop.f32.mrb[29].mxu0 }
 0x893   : > { %v1742_v21 = vpop.f32.mrb[30].mxu0 }
 0x894   : > { %v1747_v22 = vpack.c.bf16 %v1740_v19, %v1740_v19  ;;  %v3064_v23 = vpop.f32.mrb[31].mxu0 }
 0x896   : > { %v1808_v24 = vsel %vm1150_vm4, %v1747_v22, 0 }
 0x897   : > { %3072 = vmatpush3.bf16.msra.mxu0 %v1808_v24  ;;  %v894_v24 = vld [vmem:[%s4856_s19 + $0xc] sm:$0xf] }
 0x898   : > { %3083 = vmatprep.subr.bf16.mxu0 %v4075_v1 }
 0x961   : > { %v1788_v12 = vpop.f32.mrb[28].mxu1 }
 0x962   : > { %v3069_v13 = vpop.f32.mrb[29].mxu1  ;;  %v1794_v14 = vsel %vm1090_vm3, %v1788_v12, -inf }
 0x963   : > { %1795 = vmax.xlane.f32.xlu0 %v1794_v14  ;;  %v1791_v15 = vpop.f32.mrb[30].mxu1 }
 0x964   : > { %v3070_v16 = vpop.f32.mrb[31].mxu1 }
 0x9f0   : > { %v1796_v25 = vpop.xlane.xlu0 %1795 }
 0x9f1   : > { %v1797_v26 = vsub.f32 %v1788_v12, %v1796_v25  ;;  %v2186_v25 = vsel %vm1150_vm4, %v894_v24, 0 }
 0x9f3   : > { %v1798_v27 = vmul.f32 1.442695, %v1797_v26 }
 0x9f5   : > { %3428 = vpow2.f32 %v1798_v27 }
 0x9ff   : > { %v3429_v28 = vpop.eup %3428 }
 0xa00   : > { %v1800_v29 = vsel %vm1090_vm3, %v3429_v28, 0.0  ;;  %v1803_v30 = vpack.c.bf16 %v3429_v28, %v3429_v28 }
 0xa01   : > { %1801 = vadd.xlane.f32.xlu1 %v1800_v29 }
 0xa02   : > { %3074 = vmatmul.mubr.msk.bf16.vlgmr.msra.gmra.mrb[32].mxu0 %vm1090_vm3, %v1803_v30 }
 0xa03   : > { %3087 = vmatprep.mubr.msk.bf16.mxu0 %vm4076_vm1, %v4075_v1  ;;  %3084 = vmatpush3.bf16.msra.mxu0 %v3410_v33 }
 0xa04   : > { %3085 = vmatprep.subr.bf16.mxu0 %v4075_v1 }
 0xa07   : > { %3086 = vmatpush3.bf16.msra.mxu0 %v3411_v34  ;;  %v2860_v34 = vld [vmem:[%s895_s20] ss:$0 sm:$0xff] }
 0xa08   : > { %3099 = vmatprep.subr.bf16.mxu0 %v4075_v1 }
 0xa0a   : > { %3088 = vmatmul.mubr.msk.bf16.vlgmr.msra.gmra.mrb[36].mxu0 %vm927_vm2, %v4775_v7 }
 0xa0b   : > { %3103 = vmatprep.mubr.msk.bf16.mxu0 %vm4076_vm1, %v4075_v1  ;;  %3100 = vmatpush3.bf16.msra.mxu0 %v3412_v49  ;;  %v3415_v49 = vld [vmem:[%s4854_s6 + $0x8] sm:$0xff]  }
 0xa0c   : > { %3101 = vmatprep.subr.bf16.mxu0 %v4075_v1 }
 0xa0f   : > { %3102 = vmatpush3.bf16.msra.mxu0 %v3413_v50 }
 0xa10   : > { %3113 = vmatprep.subr.bf16.mxu0 %v4075_v1 }
 0xa12   : > { %3104 = vmatmul.mubr.msk.bf16.vlgmr.msra.gmra.mrb[40].mxu0 %vm927_vm2, %v4775_v7 }
 0xa13   : > { %3115 = vmatprep.mubr.msk.bf16.mxu0 %vm4076_vm1, %v4075_v1 }
 0xa8e   : > { %v1802_v35 = vpop.xlane.xlu1 %1801 }
 0xa8f   : > { %3430 = vrcp.f32 %v1802_v35 }
 0xa99   : > { %v3431_v36 = vpop.eup %3430 }
 0xad5   : > { %v1844_v37 = vpop.f32.mrb[32].mxu0 }
 0xad6   : > { %v1851_v38 = vmul.f32 %v3431_v36, %v1844_v37  ;;  %v3075_v39 = vpop.f32.mrb[33].mxu0 }
 0xad7   : > { %v1847_v40 = vpop.f32.mrb[34].mxu0 }
 0xad8   : > { %v1852_v42 = vpack.c.bf16 %v1851_v38, %v1851_v38  ;;  %v3076_v43 = vpop.f32.mrb[35].mxu0 }
 0xada   : > { %3080 = vmatmul.mubr.msk.bf16.vlgmr.msra.gmra.mrb[32].mxu1 %vm1090_vm3, %v1852_v42 }
 0xadb   : > { %3092 = vmatpush3.bf16.msra.mxu1 %v3408_v41  ;;  %3095 = vmatprep.mubr.msk.bf16.mxu1 %vm4076_vm1, %v4075_v1 }
 0xadc   : > { %3093 = vmatprep.subr.bf16.mxu1 %v4075_v1 }
 0xadd   : > { %v1952_v45 = vpop.f32.mrb[36].mxu0 }
 0xade   : > { %v3089_v46 = vpop.f32.mrb[37].mxu0  ;;  %v1953_v2 = vadd.f32 %v2845_v61, %v1952_v45  ;;  %v3418_v61 = vld [vmem:[%s2274_s29 + $0x10] sm:$0xff]  }
 0xadf   : > { %3094 = vmatpush3.bf16.msra.mxu1 %v3409_v44  ;;  %v1955_v47 = vpop.f32.mrb[38].mxu0 }
 0xae0   : > { %3107 = vmatprep.subr.bf16.mxu1 %v4075_v1  ;;  %v3090_v48 = vpop.f32.mrb[39].mxu0 }
 0xae1   : > { %v3414_v48 = vld [vmem:[%s4854_s6] sm:$0xff]  }
 0xae2   : > { %3096 = vmatmul.mubr.msk.bf16.vlgmr.msra.gmra.mrb[36].mxu1 %vm927_vm2, %v4775_v7 }
 0xae3   : > { %3109 = vmatprep.mubr.msk.bf16.mxu1 %vm4076_vm1, %v4075_v1 }
 0xae5   : > { %v2068_v11 = vpop.f32.mrb[40].mxu0 }
 0xae6   : > { %v2069_v12 = vadd.f32 %v2853_v10, %v2068_v11  ;;  %v3105_v13 = vpop.f32.mrb[41].mxu0 }
 0xae7   : > { %v2071_v14 = vpop.f32.mrb[42].mxu0 }
 0xae8   : > { %v2076_v15 = vpack.c.bf16 %v2069_v12, %v2069_v12  ;;  %v3106_v16 = vpop.f32.mrb[43].mxu0 }
 0xaea   : > { %v2137_v17 = vsel %vm1150_vm4, %v2076_v15, 0 }
 0xaeb   : > { %3114 = vmatpush3.bf16.msra.mxu0 %v2137_v17 }
 0xaec   : > { %3125 = vmatprep.subr.bf16.mxu0 %v4075_v1 }
 0xbad   : > { %v1893_v51 = vpop.f32.mrb[32].mxu1 }
 0xbae   : > { %v4946_v52 = vadd.f32 %v1893_v51, %v4901_v62  ;;  %v3081_v53 = vpop.f32.mrb[33].mxu1  ;;  %v2074_v62 = vpack.c.bf16 %v1953_v2, %v1953_v2 }
 0xbaf   : > { %v1896_v54 = vpop.f32.mrb[34].mxu1  ;;  %v2861_v53 = vld [vmem:[%s897_s0] ss:$0 sm:$0xff] }
 0xbb0   : > { %v3082_v55 = vpop.f32.mrb[35].mxu1 }
 0xbb1   : > { %v2862_v55 = vld [vmem:[%s899_s22] ss:$0 sm:$0xff] }
 0xbb5   : > { %v2010_v57 = vpop.f32.mrb[36].mxu1 }
 0xbb6   : > { %v2011_v58 = vadd.f32 %v2849_v56, %v2010_v57  ;;  %v3097_v59 = vpop.f32.mrb[37].mxu1 }
 0xbb7   : > { %v2013_v60 = vpop.f32.mrb[38].mxu1  ;;  %v3416_v59 = vld [vmem:[%s2274_s29] sm:$0xff]  }
 0xbb8   : > { %v2075_v63 = vpack.c.bf16 %v2011_v58, %v2011_v58  ;;  %v3098_v0 = vpop.f32.mrb[39].mxu1  ;;  %v3417_v60 = vld [vmem:[%s2274_s29 + $0x8] sm:$0xff]  }
 0xbb9   : > { %v2866_v0 = vld [vmem:[%s905_s5] ss:$0 sm:$0xff] }
 0xbba   : > { %v2081_v7 = vsel %vm1090_vm3, %v2075_v63, 0  ;;  %v3419_v63 = vld [vmem:[%s2274_s29 + $0x18] sm:$0xff]  }
 0xbbb   : > { %3108 = vmatpush3.bf16.xpose.msra.mxu1 %v2081_v7 }
 0xbbc   : > { %3119 = vmatprep.subr.bf16.mxu1 %v4075_v1 }
 0xbc2   : > { %3110 = vmatmul.mubr.msk.bf16.vlgmr.msra.gmra.mrb[40].mxu1 %vm1090_vm3, %v2074_v62 }
 0xbc3   : > { %3121 = vmatprep.mubr.msk.bf16.mxu1 %vm4076_vm1, %v4075_v1  ;;  %3120 = vmatpush3.bf16.msra.mxu1 %v2186_v25 }
 0xbc4   : > { %3133 = vmatprep.subr.bf16.mxu1 %v4075_v1 }
 0xc95   : > { %v2117_v4 = vpop.f32.mrb[40].mxu1 }
 0xc96   : > { %v3111_v5 = vpop.f32.mrb[41].mxu1  ;;  %v2123_v6 = vsel %vm1090_vm3, %v2117_v4, -inf }
 0xc97   : > { %2124 = vmax.xlane.f32.xlu0 %v2123_v6  ;;  %v2120_v8 = vpop.f32.mrb[42].mxu1 }
 0xc98   : > { %v3112_v9 = vpop.f32.mrb[43].mxu1 }
 0xd24   : > { %v2125_v18 = vpop.xlane.xlu0 %2124 }
 0xd25   : > { %v2126_v19 = vsub.f32 %v2117_v4, %v2125_v18 }
 0xd27   : > { %v2127_v20 = vmul.f32 1.442695, %v2126_v19 }
 0xd29   : > { %3432 = vpow2.f32 %v2127_v20 }
 0xd33   : > { %v3433_v21 = vpop.eup %3432 }
 0xd34   : > { %v2129_v22 = vsel %vm1090_vm3, %v3433_v21, 0.0  ;;  %v2132_v23 = vpack.c.bf16 %v3433_v21, %v3433_v21 }
 0xd35   : > { %2130 = vadd.xlane.f32.xlu1 %v2129_v22 }
 0xd36   : > { %3116 = vmatmul.mubr.msk.bf16.vlgmr.msra.gmra.mrb[44].mxu0 %vm1090_vm3, %v2132_v23 }
 0xd37   : > { %3129 = vmatprep.mubr.msk.bf16.mxu0 %vm4076_vm1, %v4075_v1  ;;  %3126 = vmatpush3.bf16.msra.mxu0 %v3414_v48 }
 0xd38   : > { %3127 = vmatprep.subr.bf16.mxu0 %v4075_v1 }
 0xd3b   : > { %3128 = vmatpush3.bf16.msra.mxu0 %v3415_v49  ;;  %v2876_v49 = vld [vmem:[%s901_s24] ss:$0 sm:$0xff] }
 0xdc2   : > { %v2131_v26 = vpop.xlane.xlu1 %2130 }
 0xdc3   : > { %3434 = vrcp.f32 %v2131_v26 }
 0xdcd   : > { %v3435_v27 = vpop.eup %3434 }
 0xe09   : > { %v2173_v28 = vpop.f32.mrb[44].mxu0 }
 0xe0a   : > { %v2180_v29 = vmul.f32 %v3435_v27, %v2173_v28  ;;  %v3117_v30 = vpop.f32.mrb[45].mxu0 }
 0xe0b   : > { %v2176_v31 = vpop.f32.mrb[46].mxu0 }
 0xe0c   : > { %v2181_v32 = vpack.c.bf16 %v2180_v29, %v2180_v29  ;;  %v3118_v33 = vpop.f32.mrb[47].mxu0 }
 0xe0e   : > { %3122 = vmatmul.mubr.msk.bf16.vlgmr.msra.gmra.mrb[44].mxu1 %vm1090_vm3, %v2181_v32  ;;  %v2870_v32 = vld [vmem:[%s907_s28] ss:$0 sm:$0xff] }
 0xe0f   : > { %3141 = vmatprep.mubr.msk.bf16.mxu1 %vm4076_vm1, %v4075_v1  ;;  %3134 = vmatpush3.bf16.msra.mxu1 %v3416_v59 }
 0xe10   : > { %3135 = vmatprep.subr.bf16.mxu1 %v4075_v1 }
 0xe13   : > { %3136 = vmatpush3.bf16.msra.mxu1 %v3417_v60 }
 0xe14   : > { %3137 = vmatprep.subr.bf16.mxu1 %v4075_v1 }
 0xe17   : > { %3138 = vmatpush3.bf16.msra.mxu1 %v3418_v61 }
 0xe18   : > { %3139 = vmatprep.subr.bf16.mxu1 %v4075_v1 }
 0xe1b   : > { %3140 = vmatpush3.bf16.msra.mxu1 %v3419_v63 }
 0xee1   : > { %v2222_v35 = vpop.f32.mrb[44].mxu1 }
 0xee2   : > { %v2228_v36 = vadd.f32 %v2222_v35, %v4946_v52  ;;  %v3123_v37 = vpop.f32.mrb[45].mxu1 }
 0xee3   : > { %v2225_v38 = vpop.f32.mrb[46].mxu1 }
 0xee4   : > { %v2235_v39 = vadd.f32 %v2860_v34, %v2228_v36  ;;  %v3124_v40 = vpop.f32.mrb[47].mxu1 }
 0xee6   : > { %v2236_v41 = vadd.f32 %v2235_v39, %v4761_v3 }
 0xee8   : > { %v2237_v42 = vsel %vm927_vm2, %v2236_v41, 0.0 }
 0xee9   : > { %2238 = vadd.xlane.f32.xlu0 %v2237_v42 }
 0xf76   : > { %v2239_v43 = vpop.xlane.xlu0 %2238 }
 0xf77   : > { %v2241_v44 = vmul.f32 0.03125, %v2239_v43 }
 0xf79   : > { %v2242_v45 = vsub.f32 %v2236_v41, %v2241_v44 }
 0xf7b   : > { %v2243_v46 = vmul.f32 %v2242_v45, %v2242_v45 }
 0xf7d   : > { %v2244_v47 = vsel %vm927_vm2, %v2243_v46, 0.0 }
 0xf7e   : > { %2245 = vadd.xlane.f32.xlu1 %v2244_v47 }
0x100b   : > { %v2246_v3 = vpop.xlane.xlu1 %2245 }
0x100c   : > { %v2247_v50 = vmul.f32 0.03125, %v2246_v3 }
0x100e   : > { %v2248_v51 = vadd.f32 1e-05, %v2247_v50  ;;  %v2877_v50 = vld [vmem:[%s903_s26] ss:$0 sm:$0xff] }
0x1010   : > { %3436 = vrsqrt.f32 %v2248_v51 }
0x101a   : > { %v3437_v52 = vpop.eup %3436 }
0x101b   : > { %v2250_v54 = vmul.f32 %v3437_v52, %v2242_v45 }
0x101d   : > { %v2257_v56 = vmul.f32 %v2861_v53, %v2250_v54 }
0x101f   : > { %v2264_v57 = vadd.f32 %v2862_v55, %v2257_v56 }
0x1021   : > { %v2265_v58 = vpack.c.bf16 %v2264_v57, %v2264_v57 }
0x1023   : > { %3130 = vmatmul.mubr.msk.bf16.vlgmr.msra.gmra.mrb[48].mxu0 %vm927_vm2, %v2265_v58 }
0x10f6   : > { %v2338_v7 = vpop.f32.mrb[48].mxu0 }
0x10f7   : > { %v2339_v2 = vadd.f32 %v2866_v0, %v2338_v7  ;;  %v3131_v62 = vpop.f32.mrb[49].mxu0 }
0x10f8   : > { %v2341_v4 = vpop.f32.mrb[50].mxu0 }
0x10f9   : > { %v2345_v5 = vmul.f32 0.70710677, %v2339_v2  ;;  %v3132_v6 = vpop.f32.mrb[51].mxu0  ;;  %v2344_v28 = vmul.f32 0.5, %v2339_v2 }
0x10fb   : > { %v2346_v8 = vand.u32 2147483647, %v2345_v5  ;;  %vm2366_vm5 = vcmp.ge.f32.partialorder %v2345_v5, 0.0 }
0x10fd   : > { %v2347_v9 = vmul.f32 0.3275911, %v2346_v8  ;;  %v2360_v11 = vsub.f32 0.0, %v2346_v8 }
0x10ff   : > { %v2348_v10 = vadd.f32 1.0, %v2347_v9  ;;  %v2361_v13 = vmul.f32 %v2360_v11, %v2346_v8 }
0x1101   : > { %3438 = vrcp.f32 %v2348_v10  ;;  %v2362_v1 = vmul.f32 1.442695, %v2361_v13 }
0x1103   : > { %3440 = vpow2.f32 %v2362_v1 }
0x110b   : > { %v3439_v12 = vpop.eup %3438 }
0x110c   : > { %v2351_v14 = vmul.f32 1.0614054, %v3439_v12 }
0x110d   : > { %v3441_v23 = vpop.eup %3440 }
0x110e   : > { %v2352_v15 = vadd.f32 -1.4531521, %v2351_v14 }
0x1110   : > { %v2353_v16 = vmul.f32 %v3439_v12, %v2352_v15 }
0x1112   : > { %v2354_v17 = vadd.f32 1.4214138, %v2353_v16 }
0x1114   : > { %v2355_v18 = vmul.f32 %v3439_v12, %v2354_v17 }
0x1116   : > { %v2356_v19 = vadd.f32 -0.28449672, %v2355_v18 }
0x1118   : > { %v2357_v20 = vmul.f32 %v3439_v12, %v2356_v19 }
0x111a   : > { %v2358_v21 = vadd.f32 0.2548296, %v2357_v20 }
0x111c   : > { %v2359_v22 = vmul.f32 %v3439_v12, %v2358_v21 }
0x111e   : > { %v2364_v24 = vmul.f32 %v3441_v23, %v2359_v22 }
0x1120   : > { %v2365_v25 = vsub.f32 1.0, %v2364_v24 }
0x1122   : > { %v2367_v26 = vsub.f32 0.0, %v2365_v25 }
0x1124   : > { %v2368_v27 = vsel %vm2366_vm5, %v2365_v25, %v2367_v26 }
0x1125   : > { %v2369_v29 = vadd.f32 1.0, %v2368_v27 }
0x1127   : > { %v2370_v30 = vmul.f32 %v2369_v29, %v2344_v28 }
0x1129   : > { %v2371_v31 = vpack.c.bf16 %v2370_v30, %v2370_v30 }
0x112b   : > { %3142 = vmatmul.mubr.msk.bf16.vlgmr.msra.gmra.mrb[48].mxu1 %vm2402_vm6, %v2371_v31 }
0x11fe   : > { %v2440_v33 = vpop.f32.mrb[48].mxu1 }
0x11ff   : > { %v2441_v34 = vadd.f32 %v2870_v32, %v2440_v33  ;;  %v3143_v35 = vpop.f32.mrb[49].mxu1 }
0x1200   : > { %v2443_v36 = vpop.f32.mrb[50].mxu1 }
0x1201   : > { %v3144_v37 = vpop.f32.mrb[51].mxu1  ;;  %v2446_v38 = vadd.f32 %v2441_v34, %v2264_v57 }
0x1203   : > { %v2447_v39 = vsel %vm927_vm2, %v2446_v38, 0.0 }
0x1204   : > { %2448 = vadd.xlane.f32.xlu0 %v2447_v39 }
0x1291   : > { %v2449_v40 = vpop.xlane.xlu0 %2448 }
0x1292   : > { %v2450_v41 = vmul.f32 0.03125, %v2449_v40 }
0x1294   : > { %v2451_v42 = vsub.f32 %v2446_v38, %v2450_v41 }
0x1296   : > { %v2452_v43 = vmul.f32 %v2451_v42, %v2451_v42 }
0x1298   : > { %v2453_v44 = vsel %vm927_vm2, %v2452_v43, 0.0 }
0x1299   : > { %2454 = vadd.xlane.f32.xlu1 %v2453_v44 }
0x1326   : > { %v2455_v45 = vpop.xlane.xlu1 %2454 }
0x1327   : > { %v2456_v46 = vmul.f32 0.03125, %v2455_v45 }
0x1329   : > { %v2457_v47 = vadd.f32 1e-05, %v2456_v46 }
0x132b   : > { %3442 = vrsqrt.f32 %v2457_v47 }
0x1335   : > { %v3443_v48 = vpop.eup %3442 }
0x1336   : > { %v2459_v3 = vmul.f32 %v3443_v48, %v2451_v42  ;;  %2478 = sbr.rel (%p2878_p4) target bundleno = 4925 (0x133d), region = 164 }
0x1338   : > { %v2466_v51 = vmul.f32 %v2876_v49, %v2459_v3 }
0x133a   : > { %v2473_v52 = vadd.f32 %v2877_v50, %v2466_v51 }
0x133c   : > { %2474 = vst.msk [vmem:[#allocation2] sm:$0xff] %vm927_vm2, %v2473_v52  ;;  %2479 = vst.msk [vmem:[%s4750_s4] sm:$0xff] (!%p2878_p4), %vm927_vm2, %v2473_v52 }
0x133d PF: > { %s5146_s6 = sld [smem:[#allocation45_spill]]  ;;  %s5147_s22 = sld [smem:[#allocation58_spill]] }
0x133e   : > { %s2494_s29 = sshll.u32 %s4750_s4, 4  ;;  %s2481_s5 = scalar_lea.sflag [#allocation5], %s4710_s16  ;;  %s2495_s29 = int_to_ptr.vmem [resolvable:$true] %s2494_s29 }
0x133f   : > { %s3922_s28 = scalar_lea.vmem %s2495_s29, 128  ;;  %p5148_p3 = scmp.ne.s32.totalorder %s5134_s25, 0 }
0x1340   : > { %p3923_p7 = scmp.ne.s32.totalorder %s2495_s29, %s3922_s28  ;;  %s4077_s27 = smov [#allocation30]  }
0x1341   : > { %s3926_s24 = sshll.u32 %s4077_s27, 4  ;;  %s3927_s24 = int_to_ptr.vmem [resolvable:$false] %s3926_s24 }
0x1342   : > { %p3924_p13 = pnand %p3923_p7, %p5148_p3  ;;  %s3928_s26 = scalar_lea.vmem %s3927_s24, 256 }
0x1343   : > { %s2880_s19 = sshll.u32 %s5146_s6, 7  ;;  %p3929_p2 = scmp.lt.s32.totalorder %s2495_s29, %s3927_s24 }
0x1344   : > { %s4998_s21 = scalar_lea.hbm %s5147_s22, %s2880_s19  ;;  %p3925_p0 = pneg %p3924_p13 }
0x1345   : > { %p3930_p1 = scmp.lt.s32.totalorder %s3928_s26, %s3922_s28 }
0x1347   : > { %p3931_p6 = por %p3930_p1, %p3929_p2 }
0x1349   : > { %p3932_p9 = pnand %p3931_p6, %p3925_p0 }
0x134b   : > { %3935 = shalt.err (!%p3932_p9)
}
0x134c   : > { %s3936_s16 = scalar_lea.hbm %s4998_s21, 128  ;;  %s3940_s19 = scalar_lea.hbm %s5147_s22, 256 }
0x134d   : > { %p3937_p5 = scmp.ne.s32.totalorder %s4998_s21, %s3936_s16  ;;  %p3941_p12 = scmp.lt.u32.totalorder %s4998_s21, %s5147_s22 }
0x134e   : > { %p3942_p11 = scmp.lt.u32.totalorder %s3940_s19, %s3936_s16  ;;  %p3944_p7 = scmp.lt.u32.totalorder %s3936_s16, %s4998_s21 }
0x134f   : > { %p3938_p10 = pnand %p3937_p5, %p5148_p3 }
0x1350   : > { %p3943_p4 = por %p3942_p11, %p3941_p12 }
0x1351   : > { %p3939_p8 = pneg %p3938_p10 }
0x1352   : > { %p3945_p13 = por %p3944_p7, %p3943_p4 }
0x1354   : > { %p3946_p0 = pnand %p3945_p13, %p3939_p8 }
0x1356   : > { %3949 = shalt.err (!%p3946_p0)
}
0x1357   : > { %3211 = dma.vmem_to_hbm [thread:$0]  (%p5148_p3), %s2495_s29, 128, %s4998_s21, %s2481_s5  }
0x1358 PF: > { %s5149_s28 = sld [smem:[#allocation41_spill]]  ;;  %p3303_p2 = scmp.ge.s32.totalorder %s4052_s30, 2 }
0x1359   : > { %p5150_p1 = scmp.ne.s32.totalorder %s5135_s3, 0 }
0x135b   : > { %p3267_p6 = pnand %p3303_p2, %p5150_p1 }
0x135e   : > { %s2506_s27 = sand.u32 1, %s5149_s28  }
0x135f   : > { %s2507_s24 = scalar_lea.sflag [#allocation5], %s2506_s27 }
0x1360   : > { %4019 = dma.done.wait (!%p3267_p6), %s2507_s24, 128  }
0x1361   : > { %4021 = vsyncadd (!%p3267_p6), %s2507_s24, 4294967168  ;;  %s41_s30 = sadd.s32 1, %s4052_s30   ;;  %s5151_s24 = sld [smem:[#allocation42_spill]] }
0x1362   : > { %p38_p9 = scmp.ge.s32.totalorder %s41_s30, 6   ;;  %s5152_s25 = sld [smem:[#allocation43_spill]] }
0x1363   : > { %s5153_s27 = sld [smem:[#allocation46_spill]]  ;;  %s5154_s28 = sld [smem:[#allocation47_spill]] }
0x1364   : > { %s5155_s26 = smov %s5165_s1  ;;  %s5156_s29 = smov %s5159_s17 }
0x1365   : > { %s5157_s0 = smov %s5163_s23  ;;  %40 = sbr.rel (!%p38_p9) target bundleno = 25 (0x19), region = 221 }
0x136c   :  { %2512 = vsyncpa [#allocation4], 1 }
0x136d   :  { %2514 = vsyncpa [#allocation4 + $0x1], 1 }
0x136e   :  { %2515 = vsyncpa [#allocation7], 1 }
0x136f   :  { %2516 = vsyncpa [#allocation10], 1 }
0x1370   :  { %2517 = vsyncpa [#allocation13], 1 }
0x1371   :  { %2518 = vsyncpa [#allocation16], 1 }
0x1372   :  { %2519 = vsyncpa [#allocation19], 1 }
0x1373   :  { %2520 = vsyncpa [#allocation22], 1 }
0x1374   :  { %2521 = vsyncpa [#allocation25], 1 }
0x1375   :  { %2522 = vsyncpa [#allocation28], 1 }
0x1376   :  { %2523 = vsyncpa [#allocation5], 1 }
0x1377   :  { %2525 = vsyncpa [#allocation5 + $0x1], 1 }

</bundles_post_ra>
